<compile_context>
chip_gen: v7x
topology: tpu7x:2x2x1
jax: 0.10.0
libtpu: 0.0.40
codegen_flags: <defaults>
</compile_context>

<pallas_src>
import math
import functools
from functools import reduce

import jax
import jax.numpy as jnp
from jax import lax
from jax.experimental import pallas as pl
from jax.experimental.pallas import tpu as pltpu

# ----- static module configuration -------------------------------------------------
IN_DIM = (16,)
OUT_DIM = (4,)
HIDDEN = 32           # layers=(32,)
INITIAL_SCALE = 0.5
MIN_SCALE = 1e-6
MAX_SCALE = 1.0
# inverse_softplus(0.5) = log(exp(0.5) - 1)
INIT_SCALE_TRANSFORMED = math.log(math.exp(INITIAL_SCALE) - 1.0)
OUT_FLAT = reduce(lambda a, b: a * b, list(OUT_DIM))


# ----- Pallas kernel ---------------------------------------------------------------
def _hetero_gru_kernel(x_ref,
                       wih_r_ref, wih_z_ref, wih_n_ref,
                       whh_r_ref, whh_z_ref, whh_n_ref,
                       b_r_ref, b_z_ref, b_in_ref, b_hn_ref,
                       w_heads_ref, b_heads_ref,
                       mean_ref, scale_ref,
                       *, batch, seq):
    """Single gridless invocation: GRU recurrence + batched heads, all in VMEM.

    Shapes (fp32):
      x_ref       : [B*T, D]   batch-major rows (row = b*T + t)
      wih_*_ref   : [D, H]     per-gate input weights (transposed)
      whh_*_ref   : [H, H]     per-gate recurrent weights (transposed)
      b_r/b_z     : [1, H]     folded biases (b_ir+b_hr, b_iz+b_hz)
      b_in/b_hn   : [1, H]     n-gate input bias / hidden bias (kept separate)
      w_heads_ref : [H, OUT+OUT0]  concatenated mean-head || scale-head weights
      b_heads_ref : [1, OUT+OUT0]  biases (scale part includes inv_softplus(0.5))
      mean_ref    : [B*T, OUT]
      scale_ref   : [B*T, OUT0]
    """
    B, T = batch, seq
    H = whh_r_ref.shape[0]
    n_mean = mean_ref.shape[-1]

    # ---- hoisted input projection: one matmul per gate over all (b, t) rows ----
    x2d = x_ref[...]                                                    # (B*T, D)
    gi_r = jnp.dot(x2d, wih_r_ref[...], preferred_element_type=jnp.float32) + b_r_ref[...]
    gi_z = jnp.dot(x2d, wih_z_ref[...], preferred_element_type=jnp.float32) + b_z_ref[...]
    gi_n = jnp.dot(x2d, wih_n_ref[...], preferred_element_type=jnp.float32) + b_in_ref[...]
    # Free reshape (identical tiling) so the per-step access is a small sublane
    # select instead of a lane-offset slice of a 3H-wide tile.
    gi_r = gi_r.reshape(B, T, H)
    gi_z = gi_z.reshape(B, T, H)
    gi_n = gi_n.reshape(B, T, H)

    whh_r = whh_r_ref[...]
    whh_z = whh_z_ref[...]
    whh_n = whh_n_ref[...]
    b_hn = jnp.broadcast_to(b_hn_ref[...], (B, H))   # hoisted broadcast (once, not per step)

    h = jnp.zeros((B, H), dtype=jnp.float32)
    hs = []                                          # per-step hidden states, kept in vregs

    # Serial recurrence: only  h -> 3 independent dots -> gates -> h  is on the
    # critical path; the loop body contains no VMEM stores at all.
    # TODO(synk): for T >> 16 switch to lax.fori_loop with a VMEM history scratch to
    #             bound vreg live ranges; full unroll + in-register history is fine at T=8.
    # TODO(synk): on v5e/v6e, whh_* could be held resident in MXU weight registers
    #             via pltpu.matmul_push_rhs / matmul_acc_lhs to cut per-step
    #             weight-push latency.
    for t in range(T):
        gh_r = jnp.dot(h, whh_r, preferred_element_type=jnp.float32)
        gh_z = jnp.dot(h, whh_z, preferred_element_type=jnp.float32)
        gh_n = jnp.dot(h, whh_n, preferred_element_type=jnp.float32)
        r = jax.nn.sigmoid(gi_r[:, t, :] + gh_r)
        z = jax.nn.sigmoid(gi_z[:, t, :] + gh_z)
        n = jnp.tanh(gi_n[:, t, :] + r * (gh_n + b_hn))
        h = n + z * (h - n)          # == (1-z)*n + z*h, one fewer VPU op per step
        hs.append(h)

    # ---- batch-major assembly in registers (epilogue, off the serial path) -----
    # Inner concat: T one-row pieces per batch -> (T, H) full sublane tile.
    # Outer concat: B tile-aligned pieces -> (B*T, H) batch-major (row = b*T + t).
    h_all = jnp.concatenate(
        [jnp.concatenate([h_t[b:b + 1, :] for h_t in hs], axis=0) for b in range(B)],
        axis=0)                                                         # (B*T, H)

    # ---- hoisted heads: one matmul (mean || scale) over all (b, t) rows --------
    out = jnp.dot(h_all, w_heads_ref[...],
                  preferred_element_type=jnp.float32) + b_heads_ref[...]
    mean_ref[...] = out[:, :n_mean]
    pre_scale = out[:, n_mean:]
    scale_ref[...] = jnp.clip(jax.nn.softplus(pre_scale), MIN_SCALE, MAX_SCALE)


# ----- wrapper ---------------------------------------------------------------------
def hetero_gaussian_rnn_forward(x, kp):
    """x: [B, T, D] fp32 (batch_first). Returns (mean [B,T,4], scale_tril [B,T,4,4])."""
    B, T, D = x.shape
    out0 = OUT_DIM[0]

    x2d = x.reshape(B * T, D)        # pure reshape: no transpose anywhere in the wrapper

    vmem = pl.BlockSpec(memory_space=pltpu.MemorySpace.VMEM)
    kernel = functools.partial(_hetero_gru_kernel, batch=B, seq=T)
    mean2d, scale2d = pl.pallas_call(
        kernel,
        out_shape=(
            jax.ShapeDtypeStruct((B * T, OUT_FLAT), jnp.float32),
            jax.ShapeDtypeStruct((B * T, out0), jnp.float32),
        ),
        in_specs=[vmem] * 13,
        out_specs=(vmem, vmem),
        # NOTE(v7x): for B >= 16 a batch grid with dimension_semantics=("parallel",)
        # would shard the recurrence across the 2 TensorCores; pointless at B=2.
    )(
        x2d,
        kp["wih_r"], kp["wih_z"], kp["wih_n"],
        kp["whh_r"], kp["whh_z"], kp["whh_n"],
        kp["b_r"], kp["b_z"], kp["b_in"], kp["b_hn"],
        kp["w_heads"], kp["b_heads"],
    )

    mean = mean2d.reshape(B, T, OUT_FLAT)      # free reshape (already batch-major)
    scale = scale2d.reshape(B, T, out0)
    # diag_embed (glue): [B, T, OUT0, OUT0]
    scale_tril = scale[..., :, None] * jnp.eye(out0, dtype=scale.dtype)
    return mean, scale_tril


# ----- parameter construction & preparation ------------------------------------------
def make_params(key):
    """PyTorch-layout parameters (weight_ih_l0 [3H,D] with gate order r,z,n, etc.)."""
    D, H, out0 = IN_DIM[0], HIDDEN, OUT_DIM[0]
    ks = jax.random.split(key, 8)
    bg = 1.0 / math.sqrt(H)   # GRU default init bound
    bh = 1.0 / math.sqrt(H)   # Linear(in_features=H) default init bound

    def u(k, shape, bound):
        return jax.random.uniform(k, shape, jnp.float32, -bound, bound)

    return {
        "weight_ih_l0": u(ks[0], (3 * H, D), bg),
        "weight_hh_l0": u(ks[1], (3 * H, H), bg),
        "bias_ih_l0": u(ks[2], (3 * H,), bg),
        "bias_hh_l0": u(ks[3], (3 * H,), bg),
        "head_w": u(ks[4], (OUT_FLAT, H), bh),
        "head_b": u(ks[5], (OUT_FLAT,), bh),
        "scale_w": u(ks[6], (out0, H), bh),
        "scale_b": u(ks[7], (out0,), bh),
    }


def prepare_kernel_params(p):
    """One-time plumbing: split per-gate, transpose, fold biases, concat heads."""
    H = HIDDEN

    def sl(a, g):  # gate g in {0:r, 1:z, 2:n}
        return a[g * H:(g + 1) * H]

    wih, whh = p["weight_ih_l0"], p["weight_hh_l0"]
    bih, bhh = p["bias_ih_l0"], p["bias_hh_l0"]
    kp = {
        "wih_r": sl(wih, 0).T, "wih_z": sl(wih, 1).T, "wih_n": sl(wih, 2).T,   # [D, H]
        "whh_r": sl(whh, 0).T, "whh_z": sl(whh, 1).T, "whh_n": sl(whh, 2).T,   # [H, H]
        "b_r": (sl(bih, 0) + sl(bhh, 0)).reshape(1, H),
        "b_z": (sl(bih, 1) + sl(bhh, 1)).reshape(1, H),
        "b_in": sl(bih, 2).reshape(1, H),
        "b_hn": sl(bhh, 2).reshape(1, H),
        "w_heads": jnp.concatenate([p["head_w"].T, p["scale_w"].T], axis=1),   # [H, OUT+OUT0]
        "b_heads": jnp.concatenate(
            [p["head_b"], p["scale_b"] + INIT_SCALE_TRANSFORMED]).reshape(1, -1),
    }
    return {k: jnp.asarray(v, jnp.float32) for k, v in kp.items()}


# ----- pure-JAX reference (for verification, PyTorch-layout params) ------------------
def _reference_forward(x, p):
    B, T, D = x.shape
    H = HIDDEN
    wih_t, whh_t = p["weight_ih_l0"].T, p["weight_hh_l0"].T
    bih, bhh = p["bias_ih_l0"], p["bias_hh_l0"]

    def step(h, x_t):
        gi = x_t @ wih_t + bih
        gh = h @ whh_t + bhh
        r = jax.nn.sigmoid(gi[:, 0:H] + gh[:, 0:H])
        z = jax.nn.sigmoid(gi[:, H:2 * H] + gh[:, H:2 * H])
        n = jnp.tanh(gi[:, 2 * H:] + r * gh[:, 2 * H:])
        h_new = (1.0 - z) * n + z * h
        return h_new, h_new

    h0 = jnp.zeros((B, H), dtype=jnp.float32)
    _, hs = lax.scan(step, h0, jnp.transpose(x, (1, 0, 2)))   # [T, B, H]
    hs = jnp.transpose(hs, (1, 0, 2))                          # [B, T, H]
    mean = hs @ p["head_w"].T + p["head_b"]
    scale = jnp.clip(
        jax.nn.softplus(hs @ p["scale_w"].T + p["scale_b"] + INIT_SCALE_TRANSFORMED),
        MIN_SCALE, MAX_SCALE)
    scale_tril = scale[..., :, None] * jnp.eye(OUT_DIM[0], dtype=scale.dtype)
    return mean.reshape(B, T, *OUT_DIM), scale_tril


if __name__ == "__main__":
    key = jax.random.PRNGKey(0)
    k_param, k_x = jax.random.split(key)

    B, T, D = 2, 8, IN_DIM[0]
    x = jax.random.normal(k_x, (B, T, D), dtype=jnp.float32)
    torch_params = make_params(k_param)
    kparams = prepare_kernel_params(torch_params)     # one-time, outside the hot path

    mean, scale_tril = jax.jit(hetero_gaussian_rnn_forward)(x, kparams)
    jax.block_until_ready((mean, scale_tril))

    # verify against pure-JAX reference using PyTorch-layout params
    mean_ref, tril_ref = jax.jit(_reference_forward)(x, torch_params)
    assert mean.shape == (B, T, OUT_FLAT)
    assert scale_tril.shape == (B, T, OUT_DIM[0], OUT_DIM[0])
    assert jnp.allclose(mean, mean_ref, atol=1e-4, rtol=1e-4)
    assert jnp.allclose(scale_tril, tril_ref, atol=1e-4, rtol=1e-4)

    print("KERNEL_OK")
</pallas_src>

<mosaic_0001>
module attributes {stable_mosaic.version = 11 : i64} {
  func.func @_hetero_gru_kernel(%arg0: memref<16x16xf32, #tpu.memory_space<vmem>>, %arg1: memref<16x32xf32, #tpu.memory_space<vmem>>, %arg2: memref<16x32xf32, #tpu.memory_space<vmem>>, %arg3: memref<16x32xf32, #tpu.memory_space<vmem>>, %arg4: memref<32x32xf32, #tpu.memory_space<vmem>>, %arg5: memref<32x32xf32, #tpu.memory_space<vmem>>, %arg6: memref<32x32xf32, #tpu.memory_space<vmem>>, %arg7: memref<1x32xf32, #tpu.memory_space<vmem>>, %arg8: memref<1x32xf32, #tpu.memory_space<vmem>>, %arg9: memref<1x32xf32, #tpu.memory_space<vmem>>, %arg10: memref<1x32xf32, #tpu.memory_space<vmem>>, %arg11: memref<32x8xf32, #tpu.memory_space<vmem>>, %arg12: memref<1x8xf32, #tpu.memory_space<vmem>>, %arg13: memref<16x4xf32, #tpu.memory_space<vmem>>, %arg14: memref<16x4xf32, #tpu.memory_space<vmem>>) attributes {dimension_semantics = [], scalar_prefetch = 0 : i64, scratch_operands = 0 : i64, tpu.core_type = #tpu.core_type<tc>} {
    %c0 = arith.constant 0 : index
    %c0_0 = arith.constant 0 : index
    %0 = vector.load %arg0[%c0, %c0_0] : memref<16x16xf32, #tpu.memory_space<vmem>>, vector<16x16xf32>
    %c0_1 = arith.constant 0 : index
    %c0_2 = arith.constant 0 : index
    %1 = vector.load %arg1[%c0_1, %c0_2] : memref<16x32xf32, #tpu.memory_space<vmem>>, vector<16x32xf32>
    %cst = arith.constant dense<0.000000e+00> : vector<16x32xf32>
    %2 = tpu.matmul %0, %1, %cst {dimension_numbers = #tpu.dot_dimension_numbers<[1], [0], [0], [1], [0, 0, 1, 1], [], []>} : vector<16x16xf32>, vector<16x32xf32>, vector<16x32xf32> -> vector<16x32xf32>
    %c0_3 = arith.constant 0 : index
    %c0_4 = arith.constant 0 : index
    %3 = vector.load %arg7[%c0_3, %c0_4] : memref<1x32xf32, #tpu.memory_space<vmem>>, vector<1x32xf32>
    %4 = vector.broadcast %3 : vector<1x32xf32> to vector<16x32xf32>
    %5 = arith.addf %2, %4 : vector<16x32xf32>
    %c0_5 = arith.constant 0 : index
    %c0_6 = arith.constant 0 : index
    %6 = vector.load %arg2[%c0_5, %c0_6] : memref<16x32xf32, #tpu.memory_space<vmem>>, vector<16x32xf32>
    %cst_7 = arith.constant dense<0.000000e+00> : vector<16x32xf32>
    %7 = tpu.matmul %0, %6, %cst_7 {dimension_numbers = #tpu.dot_dimension_numbers<[1], [0], [0], [1], [0, 0, 1, 1], [], []>} : vector<16x16xf32>, vector<16x32xf32>, vector<16x32xf32> -> vector<16x32xf32>
    %c0_8 = arith.constant 0 : index
    %c0_9 = arith.constant 0 : index
    %8 = vector.load %arg8[%c0_8, %c0_9] : memref<1x32xf32, #tpu.memory_space<vmem>>, vector<1x32xf32>
    %9 = vector.broadcast %8 : vector<1x32xf32> to vector<16x32xf32>
    %10 = arith.addf %7, %9 : vector<16x32xf32>
    %c0_10 = arith.constant 0 : index
    %c0_11 = arith.constant 0 : index
    %11 = vector.load %arg3[%c0_10, %c0_11] : memref<16x32xf32, #tpu.memory_space<vmem>>, vector<16x32xf32>
    %cst_12 = arith.constant dense<0.000000e+00> : vector<16x32xf32>
    %12 = tpu.matmul %0, %11, %cst_12 {dimension_numbers = #tpu.dot_dimension_numbers<[1], [0], [0], [1], [0, 0, 1, 1], [], []>} : vector<16x16xf32>, vector<16x32xf32>, vector<16x32xf32> -> vector<16x32xf32>
    %c0_13 = arith.constant 0 : index
    %c0_14 = arith.constant 0 : index
    %13 = vector.load %arg9[%c0_13, %c0_14] : memref<1x32xf32, #tpu.memory_space<vmem>>, vector<1x32xf32>
    %14 = vector.broadcast %13 : vector<1x32xf32> to vector<16x32xf32>
    %15 = arith.addf %12, %14 : vector<16x32xf32>
    %16 = vector.shape_cast %5 : vector<16x32xf32> to vector<2x8x32xf32>
    %17 = vector.shape_cast %10 : vector<16x32xf32> to vector<2x8x32xf32>
    %18 = vector.shape_cast %15 : vector<16x32xf32> to vector<2x8x32xf32>
    %c0_15 = arith.constant 0 : index
    %c0_16 = arith.constant 0 : index
    %19 = vector.load %arg4[%c0_15, %c0_16] : memref<32x32xf32, #tpu.memory_space<vmem>>, vector<32x32xf32>
    %c0_17 = arith.constant 0 : index
    %c0_18 = arith.constant 0 : index
    %20 = vector.load %arg5[%c0_17, %c0_18] : memref<32x32xf32, #tpu.memory_space<vmem>>, vector<32x32xf32>
    %c0_19 = arith.constant 0 : index
    %c0_20 = arith.constant 0 : index
    %21 = vector.load %arg6[%c0_19, %c0_20] : memref<32x32xf32, #tpu.memory_space<vmem>>, vector<32x32xf32>
    %c0_21 = arith.constant 0 : index
    %c0_22 = arith.constant 0 : index
    %22 = vector.load %arg10[%c0_21, %c0_22] : memref<1x32xf32, #tpu.memory_space<vmem>>, vector<1x32xf32>
    %23 = vector.shape_cast %22 : vector<1x32xf32> to vector<1x32xf32>
    %24 = vector.broadcast %23 : vector<1x32xf32> to vector<2x32xf32>
    %cst_23 = arith.constant 0.000000e+00 : f32
    %25 = vector.broadcast %cst_23 : f32 to vector<2x32xf32>
    %cst_24 = arith.constant dense<0.000000e+00> : vector<2x32xf32>
    %26 = tpu.matmul %25, %19, %cst_24 {dimension_numbers = #tpu.dot_dimension_numbers<[1], [0], [0], [1], [0, 0, 1, 1], [], []>} : vector<2x32xf32>, vector<32x32xf32>, vector<2x32xf32> -> vector<2x32xf32>
    %cst_25 = arith.constant dense<0.000000e+00> : vector<2x32xf32>
    %27 = tpu.matmul %25, %20, %cst_25 {dimension_numbers = #tpu.dot_dimension_numbers<[1], [0], [0], [1], [0, 0, 1, 1], [], []>} : vector<2x32xf32>, vector<32x32xf32>, vector<2x32xf32> -> vector<2x32xf32>
    %cst_26 = arith.constant dense<0.000000e+00> : vector<2x32xf32>
    %28 = tpu.matmul %25, %21, %cst_26 {dimension_numbers = #tpu.dot_dimension_numbers<[1], [0], [0], [1], [0, 0, 1, 1], [], []>} : vector<2x32xf32>, vector<32x32xf32>, vector<2x32xf32> -> vector<2x32xf32>
    %29 = vector.extract_strided_slice %16 {offsets = [0, 0, 0], sizes = [2, 1, 32], strides = [1, 1, 1]} : vector<2x8x32xf32> to vector<2x1x32xf32>
    %30 = vector.shape_cast %29 : vector<2x1x32xf32> to vector<2x32xf32>
    %31 = arith.addf %30, %26 : vector<2x32xf32>
    %32 = arith.negf %31 : vector<2x32xf32>
    %33 = math.exp %32 : vector<2x32xf32>
    %cst_27 = arith.constant 1.000000e+00 : f32
    %34 = vector.broadcast %cst_27 : f32 to vector<2x32xf32>
    %35 = arith.addf %34, %33 : vector<2x32xf32>
    %36 = arith.divf %34, %35 : vector<2x32xf32>
    %37 = vector.extract_strided_slice %17 {offsets = [0, 0, 0], sizes = [2, 1, 32], strides = [1, 1, 1]} : vector<2x8x32xf32> to vector<2x1x32xf32>
    %38 = vector.shape_cast %37 : vector<2x1x32xf32> to vector<2x32xf32>
    %39 = arith.addf %38, %27 : vector<2x32xf32>
    %40 = arith.negf %39 : vector<2x32xf32>
    %41 = math.exp %40 : vector<2x32xf32>
    %cst_28 = arith.constant 1.000000e+00 : f32
    %42 = vector.broadcast %cst_28 : f32 to vector<2x32xf32>
    %43 = arith.addf %42, %41 : vector<2x32xf32>
    %44 = arith.divf %42, %43 : vector<2x32xf32>
    %45 = vector.extract_strided_slice %18 {offsets = [0, 0, 0], sizes = [2, 1, 32], strides = [1, 1, 1]} : vector<2x8x32xf32> to vector<2x1x32xf32>
    %46 = vector.shape_cast %45 : vector<2x1x32xf32> to vector<2x32xf32>
    %47 = arith.addf %28, %24 : vector<2x32xf32>
    %48 = arith.mulf %36, %47 : vector<2x32xf32>
    %49 = arith.addf %46, %48 : vector<2x32xf32>
    %50 = math.tanh %49 : vector<2x32xf32>
    %51 = arith.subf %25, %50 : vector<2x32xf32>
    %52 = arith.mulf %44, %51 : vector<2x32xf32>
    %53 = arith.addf %50, %52 : vector<2x32xf32>
    %cst_29 = arith.constant dense<0.000000e+00> : vector<2x32xf32>
    %54 = tpu.matmul %53, %19, %cst_29 {dimension_numbers = #tpu.dot_dimension_numbers<[1], [0], [0], [1], [0, 0, 1, 1], [], []>} : vector<2x32xf32>, vector<32x32xf32>, vector<2x32xf32> -> vector<2x32xf32>
    %cst_30 = arith.constant dense<0.000000e+00> : vector<2x32xf32>
    %55 = tpu.matmul %53, %20, %cst_30 {dimension_numbers = #tpu.dot_dimension_numbers<[1], [0], [0], [1], [0, 0, 1, 1], [], []>} : vector<2x32xf32>, vector<32x32xf32>, vector<2x32xf32> -> vector<2x32xf32>
    %cst_31 = arith.constant dense<0.000000e+00> : vector<2x32xf32>
    %56 = tpu.matmul %53, %21, %cst_31 {dimension_numbers = #tpu.dot_dimension_numbers<[1], [0], [0], [1], [0, 0, 1, 1], [], []>} : vector<2x32xf32>, vector<32x32xf32>, vector<2x32xf32> -> vector<2x32xf32>
    %57 = vector.extract_strided_slice %16 {offsets = [0, 1, 0], sizes = [2, 1, 32], strides = [1, 1, 1]} : vector<2x8x32xf32> to vector<2x1x32xf32>
    %58 = vector.shape_cast %57 : vector<2x1x32xf32> to vector<2x32xf32>
    %59 = arith.addf %58, %54 : vector<2x32xf32>
    %60 = arith.negf %59 : vector<2x32xf32>
    %61 = math.exp %60 : vector<2x32xf32>
    %cst_32 = arith.constant 1.000000e+00 : f32
    %62 = vector.broadcast %cst_32 : f32 to vector<2x32xf32>
    %63 = arith.addf %62, %61 : vector<2x32xf32>
    %64 = arith.divf %62, %63 : vector<2x32xf32>
    %65 = vector.extract_strided_slice %17 {offsets = [0, 1, 0], sizes = [2, 1, 32], strides = [1, 1, 1]} : vector<2x8x32xf32> to vector<2x1x32xf32>
    %66 = vector.shape_cast %65 : vector<2x1x32xf32> to vector<2x32xf32>
    %67 = arith.addf %66, %55 : vector<2x32xf32>
    %68 = arith.negf %67 : vector<2x32xf32>
    %69 = math.exp %68 : vector<2x32xf32>
    %cst_33 = arith.constant 1.000000e+00 : f32
    %70 = vector.broadcast %cst_33 : f32 to vector<2x32xf32>
    %71 = arith.addf %70, %69 : vector<2x32xf32>
    %72 = arith.divf %70, %71 : vector<2x32xf32>
    %73 = vector.extract_strided_slice %18 {offsets = [0, 1, 0], sizes = [2, 1, 32], strides = [1, 1, 1]} : vector<2x8x32xf32> to vector<2x1x32xf32>
    %74 = vector.shape_cast %73 : vector<2x1x32xf32> to vector<2x32xf32>
    %75 = arith.addf %56, %24 : vector<2x32xf32>
    %76 = arith.mulf %64, %75 : vector<2x32xf32>
    %77 = arith.addf %74, %76 : vector<2x32xf32>
    %78 = math.tanh %77 : vector<2x32xf32>
    %79 = arith.subf %53, %78 : vector<2x32xf32>
    %80 = arith.mulf %72, %79 : vector<2x32xf32>
    %81 = arith.addf %78, %80 : vector<2x32xf32>
    %cst_34 = arith.constant dense<0.000000e+00> : vector<2x32xf32>
    %82 = tpu.matmul %81, %19, %cst_34 {dimension_numbers = #tpu.dot_dimension_numbers<[1], [0], [0], [1], [0, 0, 1, 1], [], []>} : vector<2x32xf32>, vector<32x32xf32>, vector<2x32xf32> -> vector<2x32xf32>
    %cst_35 = arith.constant dense<0.000000e+00> : vector<2x32xf32>
    %83 = tpu.matmul %81, %20, %cst_35 {dimension_numbers = #tpu.dot_dimension_numbers<[1], [0], [0], [1], [0, 0, 1, 1], [], []>} : vector<2x32xf32>, vector<32x32xf32>, vector<2x32xf32> -> vector<2x32xf32>
    %cst_36 = arith.constant dense<0.000000e+00> : vector<2x32xf32>
    %84 = tpu.matmul %81, %21, %cst_36 {dimension_numbers = #tpu.dot_dimension_numbers<[1], [0], [0], [1], [0, 0, 1, 1], [], []>} : vector<2x32xf32>, vector<32x32xf32>, vector<2x32xf32> -> vector<2x32xf32>
    %85 = vector.extract_strided_slice %16 {offsets = [0, 2, 0], sizes = [2, 1, 32], strides = [1, 1, 1]} : vector<2x8x32xf32> to vector<2x1x32xf32>
    %86 = vector.shape_cast %85 : vector<2x1x32xf32> to vector<2x32xf32>
    %87 = arith.addf %86, %82 : vector<2x32xf32>
    %88 = arith.negf %87 : vector<2x32xf32>
    %89 = math.exp %88 : vector<2x32xf32>
    %cst_37 = arith.constant 1.000000e+00 : f32
    %90 = vector.broadcast %cst_37 : f32 to vector<2x32xf32>
    %91 = arith.addf %90, %89 : vector<2x32xf32>
    %92 = arith.divf %90, %91 : vector<2x32xf32>
    %93 = vector.extract_strided_slice %17 {offsets = [0, 2, 0], sizes = [2, 1, 32], strides = [1, 1, 1]} : vector<2x8x32xf32> to vector<2x1x32xf32>
    %94 = vector.shape_cast %93 : vector<2x1x32xf32> to vector<2x32xf32>
    %95 = arith.addf %94, %83 : vector<2x32xf32>
    %96 = arith.negf %95 : vector<2x32xf32>
    %97 = math.exp %96 : vector<2x32xf32>
    %cst_38 = arith.constant 1.000000e+00 : f32
    %98 = vector.broadcast %cst_38 : f32 to vector<2x32xf32>
    %99 = arith.addf %98, %97 : vector<2x32xf32>
    %100 = arith.divf %98, %99 : vector<2x32xf32>
    %101 = vector.extract_strided_slice %18 {offsets = [0, 2, 0], sizes = [2, 1, 32], strides = [1, 1, 1]} : vector<2x8x32xf32> to vector<2x1x32xf32>
    %102 = vector.shape_cast %101 : vector<2x1x32xf32> to vector<2x32xf32>
    %103 = arith.addf %84, %24 : vector<2x32xf32>
    %104 = arith.mulf %92, %103 : vector<2x32xf32>
    %105 = arith.addf %102, %104 : vector<2x32xf32>
    %106 = math.tanh %105 : vector<2x32xf32>
    %107 = arith.subf %81, %106 : vector<2x32xf32>
    %108 = arith.mulf %100, %107 : vector<2x32xf32>
    %109 = arith.addf %106, %108 : vector<2x32xf32>
    %cst_39 = arith.constant dense<0.000000e+00> : vector<2x32xf32>
    %110 = tpu.matmul %109, %19, %cst_39 {dimension_numbers = #tpu.dot_dimension_numbers<[1], [0], [0], [1], [0, 0, 1, 1], [], []>} : vector<2x32xf32>, vector<32x32xf32>, vector<2x32xf32> -> vector<2x32xf32>
    %cst_40 = arith.constant dense<0.000000e+00> : vector<2x32xf32>
    %111 = tpu.matmul %109, %20, %cst_40 {dimension_numbers = #tpu.dot_dimension_numbers<[1], [0], [0], [1], [0, 0, 1, 1], [], []>} : vector<2x32xf32>, vector<32x32xf32>, vector<2x32xf32> -> vector<2x32xf32>
    %cst_41 = arith.constant dense<0.000000e+00> : vector<2x32xf32>
    %112 = tpu.matmul %109, %21, %cst_41 {dimension_numbers = #tpu.dot_dimension_numbers<[1], [0], [0], [1], [0, 0, 1, 1], [], []>} : vector<2x32xf32>, vector<32x32xf32>, vector<2x32xf32> -> vector<2x32xf32>
    %113 = vector.extract_strided_slice %16 {offsets = [0, 3, 0], sizes = [2, 1, 32], strides = [1, 1, 1]} : vector<2x8x32xf32> to vector<2x1x32xf32>
    %114 = vector.shape_cast %113 : vector<2x1x32xf32> to vector<2x32xf32>
    %115 = arith.addf %114, %110 : vector<2x32xf32>
    %116 = arith.negf %115 : vector<2x32xf32>
    %117 = math.exp %116 : vector<2x32xf32>
    %cst_42 = arith.constant 1.000000e+00 : f32
    %118 = vector.broadcast %cst_42 : f32 to vector<2x32xf32>
    %119 = arith.addf %118, %117 : vector<2x32xf32>
    %120 = arith.divf %118, %119 : vector<2x32xf32>
    %121 = vector.extract_strided_slice %17 {offsets = [0, 3, 0], sizes = [2, 1, 32], strides = [1, 1, 1]} : vector<2x8x32xf32> to vector<2x1x32xf32>
    %122 = vector.shape_cast %121 : vector<2x1x32xf32> to vector<2x32xf32>
    %123 = arith.addf %122, %111 : vector<2x32xf32>
    %124 = arith.negf %123 : vector<2x32xf32>
    %125 = math.exp %124 : vector<2x32xf32>
    %cst_43 = arith.constant 1.000000e+00 : f32
    %126 = vector.broadcast %cst_43 : f32 to vector<2x32xf32>
    %127 = arith.addf %126, %125 : vector<2x32xf32>
    %128 = arith.divf %126, %127 : vector<2x32xf32>
    %129 = vector.extract_strided_slice %18 {offsets = [0, 3, 0], sizes = [2, 1, 32], strides = [1, 1, 1]} : vector<2x8x32xf32> to vector<2x1x32xf32>
    %130 = vector.shape_cast %129 : vector<2x1x32xf32> to vector<2x32xf32>
    %131 = arith.addf %112, %24 : vector<2x32xf32>
    %132 = arith.mulf %120, %131 : vector<2x32xf32>
    %133 = arith.addf %130, %132 : vector<2x32xf32>
    %134 = math.tanh %133 : vector<2x32xf32>
    %135 = arith.subf %109, %134 : vector<2x32xf32>
    %136 = arith.mulf %128, %135 : vector<2x32xf32>
    %137 = arith.addf %134, %136 : vector<2x32xf32>
    %cst_44 = arith.constant dense<0.000000e+00> : vector<2x32xf32>
    %138 = tpu.matmul %137, %19, %cst_44 {dimension_numbers = #tpu.dot_dimension_numbers<[1], [0], [0], [1], [0, 0, 1, 1], [], []>} : vector<2x32xf32>, vector<32x32xf32>, vector<2x32xf32> -> vector<2x32xf32>
    %cst_45 = arith.constant dense<0.000000e+00> : vector<2x32xf32>
    %139 = tpu.matmul %137, %20, %cst_45 {dimension_numbers = #tpu.dot_dimension_numbers<[1], [0], [0], [1], [0, 0, 1, 1], [], []>} : vector<2x32xf32>, vector<32x32xf32>, vector<2x32xf32> -> vector<2x32xf32>
    %cst_46 = arith.constant dense<0.000000e+00> : vector<2x32xf32>
    %140 = tpu.matmul %137, %21, %cst_46 {dimension_numbers = #tpu.dot_dimension_numbers<[1], [0], [0], [1], [0, 0, 1, 1], [], []>} : vector<2x32xf32>, vector<32x32xf32>, vector<2x32xf32> -> vector<2x32xf32>
    %141 = vector.extract_strided_slice %16 {offsets = [0, 4, 0], sizes = [2, 1, 32], strides = [1, 1, 1]} : vector<2x8x32xf32> to vector<2x1x32xf32>
    %142 = vector.shape_cast %141 : vector<2x1x32xf32> to vector<2x32xf32>
    %143 = arith.addf %142, %138 : vector<2x32xf32>
    %144 = arith.negf %143 : vector<2x32xf32>
    %145 = math.exp %144 : vector<2x32xf32>
    %cst_47 = arith.constant 1.000000e+00 : f32
    %146 = vector.broadcast %cst_47 : f32 to vector<2x32xf32>
    %147 = arith.addf %146, %145 : vector<2x32xf32>
    %148 = arith.divf %146, %147 : vector<2x32xf32>
    %149 = vector.extract_strided_slice %17 {offsets = [0, 4, 0], sizes = [2, 1, 32], strides = [1, 1, 1]} : vector<2x8x32xf32> to vector<2x1x32xf32>
    %150 = vector.shape_cast %149 : vector<2x1x32xf32> to vector<2x32xf32>
    %151 = arith.addf %150, %139 : vector<2x32xf32>
    %152 = arith.negf %151 : vector<2x32xf32>
    %153 = math.exp %152 : vector<2x32xf32>
    %cst_48 = arith.constant 1.000000e+00 : f32
    %154 = vector.broadcast %cst_48 : f32 to vector<2x32xf32>
    %155 = arith.addf %154, %153 : vector<2x32xf32>
    %156 = arith.divf %154, %155 : vector<2x32xf32>
    %157 = vector.extract_strided_slice %18 {offsets = [0, 4, 0], sizes = [2, 1, 32], strides = [1, 1, 1]} : vector<2x8x32xf32> to vector<2x1x32xf32>
    %158 = vector.shape_cast %157 : vector<2x1x32xf32> to vector<2x32xf32>
    %159 = arith.addf %140, %24 : vector<2x32xf32>
    %160 = arith.mulf %148, %159 : vector<2x32xf32>
    %161 = arith.addf %158, %160 : vector<2x32xf32>
    %162 = math.tanh %161 : vector<2x32xf32>
    %163 = arith.subf %137, %162 : vector<2x32xf32>
    %164 = arith.mulf %156, %163 : vector<2x32xf32>
    %165 = arith.addf %162, %164 : vector<2x32xf32>
    %cst_49 = arith.constant dense<0.000000e+00> : vector<2x32xf32>
    %166 = tpu.matmul %165, %19, %cst_49 {dimension_numbers = #tpu.dot_dimension_numbers<[1], [0], [0], [1], [0, 0, 1, 1], [], []>} : vector<2x32xf32>, vector<32x32xf32>, vector<2x32xf32> -> vector<2x32xf32>
    %cst_50 = arith.constant dense<0.000000e+00> : vector<2x32xf32>
    %167 = tpu.matmul %165, %20, %cst_50 {dimension_numbers = #tpu.dot_dimension_numbers<[1], [0], [0], [1], [0, 0, 1, 1], [], []>} : vector<2x32xf32>, vector<32x32xf32>, vector<2x32xf32> -> vector<2x32xf32>
    %cst_51 = arith.constant dense<0.000000e+00> : vector<2x32xf32>
    %168 = tpu.matmul %165, %21, %cst_51 {dimension_numbers = #tpu.dot_dimension_numbers<[1], [0], [0], [1], [0, 0, 1, 1], [], []>} : vector<2x32xf32>, vector<32x32xf32>, vector<2x32xf32> -> vector<2x32xf32>
    %169 = vector.extract_strided_slice %16 {offsets = [0, 5, 0], sizes = [2, 1, 32], strides = [1, 1, 1]} : vector<2x8x32xf32> to vector<2x1x32xf32>
    %170 = vector.shape_cast %169 : vector<2x1x32xf32> to vector<2x32xf32>
    %171 = arith.addf %170, %166 : vector<2x32xf32>
    %172 = arith.negf %171 : vector<2x32xf32>
    %173 = math.exp %172 : vector<2x32xf32>
    %cst_52 = arith.constant 1.000000e+00 : f32
    %174 = vector.broadcast %cst_52 : f32 to vector<2x32xf32>
    %175 = arith.addf %174, %173 : vector<2x32xf32>
    %176 = arith.divf %174, %175 : vector<2x32xf32>
    %177 = vector.extract_strided_slice %17 {offsets = [0, 5, 0], sizes = [2, 1, 32], strides = [1, 1, 1]} : vector<2x8x32xf32> to vector<2x1x32xf32>
    %178 = vector.shape_cast %177 : vector<2x1x32xf32> to vector<2x32xf32>
    %179 = arith.addf %178, %167 : vector<2x32xf32>
    %180 = arith.negf %179 : vector<2x32xf32>
    %181 = math.exp %180 : vector<2x32xf32>
    %cst_53 = arith.constant 1.000000e+00 : f32
    %182 = vector.broadcast %cst_53 : f32 to vector<2x32xf32>
    %183 = arith.addf %182, %181 : vector<2x32xf32>
    %184 = arith.divf %182, %183 : vector<2x32xf32>
    %185 = vector.extract_strided_slice %18 {offsets = [0, 5, 0], sizes = [2, 1, 32], strides = [1, 1, 1]} : vector<2x8x32xf32> to vector<2x1x32xf32>
    %186 = vector.shape_cast %185 : vector<2x1x32xf32> to vector<2x32xf32>
    %187 = arith.addf %168, %24 : vector<2x32xf32>
    %188 = arith.mulf %176, %187 : vector<2x32xf32>
    %189 = arith.addf %186, %188 : vector<2x32xf32>
    %190 = math.tanh %189 : vector<2x32xf32>
    %191 = arith.subf %165, %190 : vector<2x32xf32>
    %192 = arith.mulf %184, %191 : vector<2x32xf32>
    %193 = arith.addf %190, %192 : vector<2x32xf32>
    %cst_54 = arith.constant dense<0.000000e+00> : vector<2x32xf32>
    %194 = tpu.matmul %193, %19, %cst_54 {dimension_numbers = #tpu.dot_dimension_numbers<[1], [0], [0], [1], [0, 0, 1, 1], [], []>} : vector<2x32xf32>, vector<32x32xf32>, vector<2x32xf32> -> vector<2x32xf32>
    %cst_55 = arith.constant dense<0.000000e+00> : vector<2x32xf32>
    %195 = tpu.matmul %193, %20, %cst_55 {dimension_numbers = #tpu.dot_dimension_numbers<[1], [0], [0], [1], [0, 0, 1, 1], [], []>} : vector<2x32xf32>, vector<32x32xf32>, vector<2x32xf32> -> vector<2x32xf32>
    %cst_56 = arith.constant dense<0.000000e+00> : vector<2x32xf32>
    %196 = tpu.matmul %193, %21, %cst_56 {dimension_numbers = #tpu.dot_dimension_numbers<[1], [0], [0], [1], [0, 0, 1, 1], [], []>} : vector<2x32xf32>, vector<32x32xf32>, vector<2x32xf32> -> vector<2x32xf32>
    %197 = vector.extract_strided_slice %16 {offsets = [0, 6, 0], sizes = [2, 1, 32], strides = [1, 1, 1]} : vector<2x8x32xf32> to vector<2x1x32xf32>
    %198 = vector.shape_cast %197 : vector<2x1x32xf32> to vector<2x32xf32>
    %199 = arith.addf %198, %194 : vector<2x32xf32>
    %200 = arith.negf %199 : vector<2x32xf32>
    %201 = math.exp %200 : vector<2x32xf32>
    %cst_57 = arith.constant 1.000000e+00 : f32
    %202 = vector.broadcast %cst_57 : f32 to vector<2x32xf32>
    %203 = arith.addf %202, %201 : vector<2x32xf32>
    %204 = arith.divf %202, %203 : vector<2x32xf32>
    %205 = vector.extract_strided_slice %17 {offsets = [0, 6, 0], sizes = [2, 1, 32], strides = [1, 1, 1]} : vector<2x8x32xf32> to vector<2x1x32xf32>
    %206 = vector.shape_cast %205 : vector<2x1x32xf32> to vector<2x32xf32>
    %207 = arith.addf %206, %195 : vector<2x32xf32>
    %208 = arith.negf %207 : vector<2x32xf32>
    %209 = math.exp %208 : vector<2x32xf32>
    %cst_58 = arith.constant 1.000000e+00 : f32
    %210 = vector.broadcast %cst_58 : f32 to vector<2x32xf32>
    %211 = arith.addf %210, %209 : vector<2x32xf32>
    %212 = arith.divf %210, %211 : vector<2x32xf32>
    %213 = vector.extract_strided_slice %18 {offsets = [0, 6, 0], sizes = [2, 1, 32], strides = [1, 1, 1]} : vector<2x8x32xf32> to vector<2x1x32xf32>
    %214 = vector.shape_cast %213 : vector<2x1x32xf32> to vector<2x32xf32>
    %215 = arith.addf %196, %24 : vector<2x32xf32>
    %216 = arith.mulf %204, %215 : vector<2x32xf32>
    %217 = arith.addf %214, %216 : vector<2x32xf32>
    %218 = math.tanh %217 : vector<2x32xf32>
    %219 = arith.subf %193, %218 : vector<2x32xf32>
    %220 = arith.mulf %212, %219 : vector<2x32xf32>
    %221 = arith.addf %218, %220 : vector<2x32xf32>
    %cst_59 = arith.constant dense<0.000000e+00> : vector<2x32xf32>
    %222 = tpu.matmul %221, %19, %cst_59 {dimension_numbers = #tpu.dot_dimension_numbers<[1], [0], [0], [1], [0, 0, 1, 1], [], []>} : vector<2x32xf32>, vector<32x32xf32>, vector<2x32xf32> -> vector<2x32xf32>
    %cst_60 = arith.constant dense<0.000000e+00> : vector<2x32xf32>
    %223 = tpu.matmul %221, %20, %cst_60 {dimension_numbers = #tpu.dot_dimension_numbers<[1], [0], [0], [1], [0, 0, 1, 1], [], []>} : vector<2x32xf32>, vector<32x32xf32>, vector<2x32xf32> -> vector<2x32xf32>
    %cst_61 = arith.constant dense<0.000000e+00> : vector<2x32xf32>
    %224 = tpu.matmul %221, %21, %cst_61 {dimension_numbers = #tpu.dot_dimension_numbers<[1], [0], [0], [1], [0, 0, 1, 1], [], []>} : vector<2x32xf32>, vector<32x32xf32>, vector<2x32xf32> -> vector<2x32xf32>
    %225 = vector.extract_strided_slice %16 {offsets = [0, 7, 0], sizes = [2, 1, 32], strides = [1, 1, 1]} : vector<2x8x32xf32> to vector<2x1x32xf32>
    %226 = vector.shape_cast %225 : vector<2x1x32xf32> to vector<2x32xf32>
    %227 = arith.addf %226, %222 : vector<2x32xf32>
    %228 = arith.negf %227 : vector<2x32xf32>
    %229 = math.exp %228 : vector<2x32xf32>
    %cst_62 = arith.constant 1.000000e+00 : f32
    %230 = vector.broadcast %cst_62 : f32 to vector<2x32xf32>
    %231 = arith.addf %230, %229 : vector<2x32xf32>
    %232 = arith.divf %230, %231 : vector<2x32xf32>
    %233 = vector.extract_strided_slice %17 {offsets = [0, 7, 0], sizes = [2, 1, 32], strides = [1, 1, 1]} : vector<2x8x32xf32> to vector<2x1x32xf32>
    %234 = vector.shape_cast %233 : vector<2x1x32xf32> to vector<2x32xf32>
    %235 = arith.addf %234, %223 : vector<2x32xf32>
    %236 = arith.negf %235 : vector<2x32xf32>
    %237 = math.exp %236 : vector<2x32xf32>
    %cst_63 = arith.constant 1.000000e+00 : f32
    %238 = vector.broadcast %cst_63 : f32 to vector<2x32xf32>
    %239 = arith.addf %238, %237 : vector<2x32xf32>
    %240 = arith.divf %238, %239 : vector<2x32xf32>
    %241 = vector.extract_strided_slice %18 {offsets = [0, 7, 0], sizes = [2, 1, 32], strides = [1, 1, 1]} : vector<2x8x32xf32> to vector<2x1x32xf32>
    %242 = vector.shape_cast %241 : vector<2x1x32xf32> to vector<2x32xf32>
    %243 = arith.addf %224, %24 : vector<2x32xf32>
    %244 = arith.mulf %232, %243 : vector<2x32xf32>
    %245 = arith.addf %242, %244 : vector<2x32xf32>
    %246 = math.tanh %245 : vector<2x32xf32>
    %247 = arith.subf %221, %246 : vector<2x32xf32>
    %248 = arith.mulf %240, %247 : vector<2x32xf32>
    %249 = arith.addf %246, %248 : vector<2x32xf32>
    %250 = vector.extract_strided_slice %53 {offsets = [0, 0], sizes = [1, 32], strides = [1, 1]} : vector<2x32xf32> to vector<1x32xf32>
    %251 = vector.extract_strided_slice %81 {offsets = [0, 0], sizes = [1, 32], strides = [1, 1]} : vector<2x32xf32> to vector<1x32xf32>
    %252 = vector.extract_strided_slice %109 {offsets = [0, 0], sizes = [1, 32], strides = [1, 1]} : vector<2x32xf32> to vector<1x32xf32>
    %253 = vector.extract_strided_slice %137 {offsets = [0, 0], sizes = [1, 32], strides = [1, 1]} : vector<2x32xf32> to vector<1x32xf32>
    %254 = vector.extract_strided_slice %165 {offsets = [0, 0], sizes = [1, 32], strides = [1, 1]} : vector<2x32xf32> to vector<1x32xf32>
    %255 = vector.extract_strided_slice %193 {offsets = [0, 0], sizes = [1, 32], strides = [1, 1]} : vector<2x32xf32> to vector<1x32xf32>
    %256 = vector.extract_strided_slice %221 {offsets = [0, 0], sizes = [1, 32], strides = [1, 1]} : vector<2x32xf32> to vector<1x32xf32>
    %257 = vector.extract_strided_slice %249 {offsets = [0, 0], sizes = [1, 32], strides = [1, 1]} : vector<2x32xf32> to vector<1x32xf32>
    %258 = tpu.concatenate %250, %251, %252, %253, %254, %255, %256, %257 in 0 : vector<1x32xf32>, vector<1x32xf32>, vector<1x32xf32>, vector<1x32xf32>, vector<1x32xf32>, vector<1x32xf32>, vector<1x32xf32>, vector<1x32xf32> -> vector<8x32xf32>
    %259 = vector.extract_strided_slice %53 {offsets = [1, 0], sizes = [1, 32], strides = [1, 1]} : vector<2x32xf32> to vector<1x32xf32>
    %260 = vector.extract_strided_slice %81 {offsets = [1, 0], sizes = [1, 32], strides = [1, 1]} : vector<2x32xf32> to vector<1x32xf32>
    %261 = vector.extract_strided_slice %109 {offsets = [1, 0], sizes = [1, 32], strides = [1, 1]} : vector<2x32xf32> to vector<1x32xf32>
    %262 = vector.extract_strided_slice %137 {offsets = [1, 0], sizes = [1, 32], strides = [1, 1]} : vector<2x32xf32> to vector<1x32xf32>
    %263 = vector.extract_strided_slice %165 {offsets = [1, 0], sizes = [1, 32], strides = [1, 1]} : vector<2x32xf32> to vector<1x32xf32>
    %264 = vector.extract_strided_slice %193 {offsets = [1, 0], sizes = [1, 32], strides = [1, 1]} : vector<2x32xf32> to vector<1x32xf32>
    %265 = vector.extract_strided_slice %221 {offsets = [1, 0], sizes = [1, 32], strides = [1, 1]} : vector<2x32xf32> to vector<1x32xf32>
    %266 = vector.extract_strided_slice %249 {offsets = [1, 0], sizes = [1, 32], strides = [1, 1]} : vector<2x32xf32> to vector<1x32xf32>
    %267 = tpu.concatenate %259, %260, %261, %262, %263, %264, %265, %266 in 0 : vector<1x32xf32>, vector<1x32xf32>, vector<1x32xf32>, vector<1x32xf32>, vector<1x32xf32>, vector<1x32xf32>, vector<1x32xf32>, vector<1x32xf32> -> vector<8x32xf32>
    %268 = tpu.concatenate %258, %267 in 0 : vector<8x32xf32>, vector<8x32xf32> -> vector<16x32xf32>
    %c0_64 = arith.constant 0 : index
    %c0_65 = arith.constant 0 : index
    %269 = vector.load %arg11[%c0_64, %c0_65] : memref<32x8xf32, #tpu.memory_space<vmem>>, vector<32x8xf32>
    %cst_66 = arith.constant dense<0.000000e+00> : vector<16x8xf32>
    %270 = tpu.matmul %268, %269, %cst_66 {dimension_numbers = #tpu.dot_dimension_numbers<[1], [0], [0], [1], [0, 0, 1, 1], [], []>} : vector<16x32xf32>, vector<32x8xf32>, vector<16x8xf32> -> vector<16x8xf32>
    %c0_67 = arith.constant 0 : index
    %c0_68 = arith.constant 0 : index
    %271 = vector.load %arg12[%c0_67, %c0_68] : memref<1x8xf32, #tpu.memory_space<vmem>>, vector<1x8xf32>
    %272 = vector.broadcast %271 : vector<1x8xf32> to vector<16x8xf32>
    %273 = arith.addf %270, %272 : vector<16x8xf32>
    %274 = vector.extract_strided_slice %273 {offsets = [0, 0], sizes = [16, 4], strides = [1, 1]} : vector<16x8xf32> to vector<16x4xf32>
    %c0_69 = arith.constant 0 : index
    %c0_70 = arith.constant 0 : index
    %275 = vector.load %arg13[%c0_69, %c0_70] : memref<16x4xf32, #tpu.memory_space<vmem>>, vector<16x4xf32>
    tpu.vector_store %arg13[%c0_69, %c0_70], %274 {strides = array<i32>} : memref<16x4xf32, #tpu.memory_space<vmem>>, vector<16x4xf32>,
    %276 = vector.extract_strided_slice %273 {offsets = [0, 4], sizes = [16, 4], strides = [1, 1]} : vector<16x8xf32> to vector<16x4xf32>
    %cst_71 = arith.constant 0.000000e+00 : f32
    %277 = vector.broadcast %cst_71 : f32 to vector<16x4xf32>
    %278 = arith.maximumf %276, %277 : vector<16x4xf32>
    %279 = vector.broadcast %cst_71 : f32 to vector<16x4xf32>
    %280 = arith.subf %276, %279 : vector<16x4xf32>
    %281 = arith.cmpf one, %280, %280 : vector<16x4xf32>
    %282 = vector.broadcast %cst_71 : f32 to vector<16x4xf32>
    %283 = arith.addf %276, %282 : vector<16x4xf32>
    %284 = math.absf %280 : vector<16x4xf32>
    %cst_72 = arith.constant 0.000000e+00 : f32
    %285 = vector.broadcast %cst_72 : f32 to vector<16x4xf32>
    %286 = arith.subf %285, %284 : vector<16x4xf32>
    %287 = math.exp %286 : vector<16x4xf32>
    %288 = math.log1p %287 : vector<16x4xf32>
    %289 = arith.addf %278, %288 : vector<16x4xf32>
    %290 = arith.select %281, %283, %289 : vector<16x4xi1>, vector<16x4xf32>
    %cst_73 = arith.constant 9.99999997E-7 : f32
    %cst_74 = arith.constant 1.000000e+00 : f32
    %291 = vector.broadcast %cst_73 : f32 to vector<16x4xf32>
    %292 = arith.maximumf %291, %290 : vector<16x4xf32>
    %293 = vector.broadcast %cst_74 : f32 to vector<16x4xf32>
    %294 = arith.minimumf %293, %292 : vector<16x4xf32>
    %c0_75 = arith.constant 0 : index
    %c0_76 = arith.constant 0 : index
    %295 = vector.load %arg14[%c0_75, %c0_76] : memref<16x4xf32, #tpu.memory_space<vmem>>, vector<16x4xf32>
    tpu.vector_store %arg14[%c0_75, %c0_76], %294 {strides = array<i32>} : memref<16x4xf32, #tpu.memory_space<vmem>>, vector<16x4xf32>,
    return
  }
}

</mosaic_0001>

<bundles_post_ra>
// kernel: hetero_gaussian_rnn_forward.1
= control target key start
LH: loop header
LB: loop body
LE: loop exit
PB: predicated region body
PF: predicated region fallthrough
CT: control target
= control target key end

     0   :  { %20 = vsyncpa [#allocation3], 0  ;;  %s4360_s0 = inlined_call_operand.vmem [shape: f32[16,16], index: 0, kind: input, shape index: {}]   ;;  %s4361_s1 = inlined_call_operand.hbm [shape: f32[16,32], index: 1, kind: input, shape index: {}]   ;;  %s4362_s2 = inlined_call_operand.hbm [shape: f32[16,32], index: 2, kind: input, shape index: {}]   ;;  %s4363_s3 = inlined_call_operand.hbm [shape: f32[16,32], index: 3, kind: input, shape index: {}]   ;;  %s4364_s4 = inlined_call_operand.vmem [shape: f32[32,32], index: 4, kind: input, shape index: {}]   ;;  %s4365_s5 = inlined_call_operand.hbm [shape: f32[32,32], index: 5, kind: input, shape index: {}]   ;;  %s4366_s6 = inlined_call_operand.hbm [shape: f32[32,32], index: 6, kind: input, shape index: {}]   ;;  %s4367_s7 = inlined_call_operand.vmem [shape: f32[1,32], index: 7, kind: input, shape index: {}]   ;;  %s4368_s8 = inlined_call_operand.vmem [shape: f32[1,32], index: 8, kind: input, shape index: {}]   ;;  %s4369_s9 = inlined_call_operand.vmem [shape: f32[1,32], index: 9, kind: input, shape index: {}]   ;;  %s4370_s10 = inlined_call_operand.vmem [shape: f32[1,32], index: 10, kind: input, shape index: {}]   ;;  %s4371_s11 = inlined_call_operand.vmem [shape: f32[32,8], index: 11, kind: input, shape index: {}]   ;;  %s4372_s12 = inlined_call_operand.vmem [shape: f32[1,8], index: 12, kind: input, shape index: {}]   ;;  %s4373_s13 = inlined_call_operand.vmem [shape: f32[16,4], index: 13, kind: output, shape index: {0}]   ;;  %s4374_s14 = inlined_call_operand.vmem [shape: f32[16,4], index: 14, kind: output, shape index: {1}]  }
   0x1   :  { %21 = vsyncpa [#allocation5], 0 }
   0x2   :  { %22 = vsyncpa [#allocation8], 0  ;;  %s3781_s29 = smov [#allocation4]   ;;  %s3782_s15 = smov [#allocation7]  }
   0x3   :  { %s42_s30 = sshll.u32 %s3781_s29, 4  ;;  %s68_s16 = sshll.u32 %s3782_s15, 4  ;;  %s43_s30 = int_to_ptr.vmem [resolvable:$true] %s42_s30  ;;  %s3867_s16 = int_to_ptr.vmem [resolvable:$true] %s68_s16 }
   0x4   :  { %s3665_s19 = scalar_lea.hbm %s4362_s2, 256 }
   0x5   :  { %p3666_p0 = scmp.ne.s32.totalorder %s4362_s2, %s3665_s19  ;;  %p3669_p1 = scmp.lt.u32.totalorder %s3665_s19, %s4362_s2 }
   0x7   :  { %p3671_p2 = pnand %p3669_p1, %p3666_p0 }
   0x9   :  { %3674 = shalt.err (!%p3671_p2)
}
   0xa   :  { %s3675_s24 = scalar_lea.vmem %s43_s30, 256  ;;  %p3680_p4 = scmp.lt.s32.totalorder %s43_s30, %s43_s30 }
   0xb   :  { %p3676_p3 = scmp.ne.s32.totalorder %s43_s30, %s3675_s24  ;;  %p3681_p5 = scmp.lt.s32.totalorder %s3675_s24, %s3675_s24 }
   0xd   :  { %p3682_p6 = por %p3681_p5, %p3680_p4 }
   0xf   :  { %p3683_p7 = pnand %p3682_p6, %p3676_p3 }
  0x11   :  { %3686 = shalt.err (!%p3683_p7)
}
  0x12   :  { %s3783_s25 = smov 128   ;;  %s3784_s26 = smov 8  }
  0x13   :  { %48 = dma.hbm_to_vmem [thread:$0]  %s4362_s2, 256, %s43_s30, [#allocation5], %s3783_s25, %s3783_s25, %s3784_s26  }
  0x14   :  { %s3687_s17 = scalar_lea.hbm %s4365_s5, 512 }
  0x15   :  { %p3688_p8 = scmp.ne.s32.totalorder %s4365_s5, %s3687_s17  ;;  %p3691_p9 = scmp.lt.u32.totalorder %s3687_s17, %s4365_s5 }
  0x17   :  { %p3693_p10 = pnand %p3691_p9, %p3688_p8 }
  0x19   :  { %3696 = shalt.err (!%p3693_p10)
}
  0x1a   :  { %s3697_s22 = scalar_lea.vmem %s3867_s16, 512  ;;  %p3702_p12 = scmp.lt.s32.totalorder %s3867_s16, %s3867_s16 }
  0x1b   :  { %p3698_p11 = scmp.ne.s32.totalorder %s3867_s16, %s3697_s22  ;;  %p3703_p13 = scmp.lt.s32.totalorder %s3697_s22, %s3697_s22 }
  0x1d   :  { %p3704_p0 = por %p3703_p13, %p3702_p12 }
  0x1f   :  { %p3705_p1 = pnand %p3704_p0, %p3698_p11 }
  0x21   :  { %3708 = shalt.err (!%p3705_p1)
}
  0x22   :  { %74 = dma.hbm_to_vmem [thread:$0]  %s4365_s5, 512, %s3867_s16, [#allocation8], %s3783_s25, %s3783_s25, %s3784_s26  }
  0x23   :  { %s3785_s23 = smov [#allocation2]   ;;  %s3786_s27 = smov [#allocation6]  }
  0x24   :  { %s30_s24 = sshll.u32 %s3785_s23, 4  ;;  %s54_s28 = sshll.u32 %s3786_s27, 4  ;;  %s31_s24 = int_to_ptr.vmem [resolvable:$true] %s30_s24  ;;  %s3904_s28 = int_to_ptr.vmem [resolvable:$true] %s54_s28 }
  0x25   :  { %s3709_s17 = scalar_lea.hbm %s4361_s1, 256 }
  0x26   :  { %p3710_p2 = scmp.ne.s32.totalorder %s4361_s1, %s3709_s17  ;;  %p3713_p3 = scmp.lt.u32.totalorder %s3709_s17, %s4361_s1 }
  0x28   :  { %p3715_p4 = pnand %p3713_p3, %p3710_p2 }
  0x2a   :  { %3718 = shalt.err (!%p3715_p4)
}
  0x2b   :  { %s3719_s5 = scalar_lea.vmem %s31_s24, 256  ;;  %p3724_p6 = scmp.lt.s32.totalorder %s31_s24, %s31_s24 }
  0x2c   :  { %p3720_p5 = scmp.ne.s32.totalorder %s31_s24, %s3719_s5  ;;  %p3725_p7 = scmp.lt.s32.totalorder %s3719_s5, %s3719_s5 }
  0x2e   :  { %p3726_p8 = por %p3725_p7, %p3724_p6 }
  0x30   :  { %p3727_p9 = pnand %p3726_p8, %p3720_p5 }
  0x32   :  { %3730 = shalt.err (!%p3727_p9)
}
  0x33   :  { %36 = dma.hbm_to_vmem [thread:$0]  %s4361_s1, 256, %s31_s24, [#allocation3], %s3783_s25, %s3783_s25, %s3784_s26  }
  0x34   :  { %s3731_s23 = scalar_lea.hbm %s4363_s3, 256 }
  0x35   :  { %p3732_p10 = scmp.ne.s32.totalorder %s4363_s3, %s3731_s23  ;;  %p3735_p11 = scmp.lt.u32.totalorder %s3731_s23, %s4363_s3 }
  0x37   :  { %p3737_p12 = pnand %p3735_p11, %p3732_p10 }
  0x39   :  { %3740 = shalt.err (!%p3737_p12)
}
  0x3a   :  { %s3741_s18 = scalar_lea.vmem %s3904_s28, 256  ;;  %p3746_p0 = scmp.lt.s32.totalorder %s3904_s28, %s3904_s28 }
  0x3b   :  { %p3742_p13 = scmp.ne.s32.totalorder %s3904_s28, %s3741_s18  ;;  %p3747_p1 = scmp.lt.s32.totalorder %s3741_s18, %s3741_s18 }
  0x3d   :  { %p3748_p2 = por %p3747_p1, %p3746_p0 }
  0x3f   :  { %p3749_p3 = pnand %p3748_p2, %p3742_p13 }
  0x41   :  { %3752 = shalt.err (!%p3749_p3)
}
  0x42   :  { %60 = dma.hbm_to_vmem [thread:$0]  %s4363_s3, 256, %s3904_s28, [#allocation5], %s3783_s25, %s3783_s25, %s3784_s26  }
  0x43   :  { %s3787_s19 = smov [#allocation9]   ;;  %s3753_s16 = scalar_lea.hbm %s4366_s6, 512 }
  0x44   :  { %s80_s20 = sshll.u32 %s3787_s19, 4  ;;  %p3754_p4 = scmp.ne.s32.totalorder %s4366_s6, %s3753_s16  ;;  %s81_s20 = int_to_ptr.vmem [resolvable:$true] %s80_s20 }
  0x45   :  { %p3757_p5 = scmp.lt.u32.totalorder %s3753_s16, %s4366_s6 }
  0x47   :  { %p3759_p6 = pnand %p3757_p5, %p3754_p4 }
  0x49   :  { %3762 = shalt.err (!%p3759_p6)
}
  0x4a   :  { %s3763_s27 = scalar_lea.vmem %s81_s20, 512  ;;  %p3768_p8 = scmp.lt.s32.totalorder %s81_s20, %s81_s20 }
  0x4b   :  { %p3764_p7 = scmp.ne.s32.totalorder %s81_s20, %s3763_s27  ;;  %p3769_p9 = scmp.lt.s32.totalorder %s3763_s27, %s3763_s27 }
  0x4d   :  { %p3770_p10 = por %p3769_p9, %p3768_p8 }
  0x4f   :  { %p3771_p11 = pnand %p3770_p10, %p3764_p7 }
  0x51   :  { %3774 = shalt.err (!%p3771_p11)
}
  0x52   :  { %86 = dma.hbm_to_vmem [thread:$0]  %s4366_s6, 512, %s81_s20, [#allocation8], %s3783_s25, %s3783_s25, %s3784_s26  }
  0x53   :  { %3775 = dma.done.wait [#allocation3], 256  }
  0x54   :  { %3776 = vsyncadd [#allocation3], 4294967040 }
  0x55   :  { %3777 = dma.done.wait [#allocation5], 512  }
  0x56   :  { %3778 = vsyncadd [#allocation5], 4294966784 }
  0x57   :  { %3779 = dma.done.wait [#allocation8], 1024  }
  0x58   :  { %3780 = vsyncadd [#allocation8], 4294966272  ;;  %vm125_vm0 = vcmask 130048   ;;  %v116_v0 = vld [vmem:[#allocation2] sm:$0xff]  ;;  %v117_v1 = vld [vmem:[#allocation2 + $0x8] sm:$0xff]  ;;  %v3788_v16 = vmov 0.0|0.0  }
  0x59   :  { %v207_v2 = vld [vmem:[#allocation4] sm:$0xff]  ;;  %v3321_v3 = vpack.c.bf16 %v117_v1, %v116_v0  ;;  %v208_v4 = vld [vmem:[#allocation4 + $0x8] sm:$0xff]  ;;  %v114_v5 = vld [vmem:[%s4360_s0] sm:$0xff]  ;;  %vm3789_vm1 = vmmov 0   ;;  %v3790_v25 = vmov 0.0   ;;  %vm663_vm2 = vcmask 1041409  }
  0x5a   :  { %v3325_v6 = vpack.c.bf16 %v208_v4, %v207_v2  ;;  %3036 = vmatprep.mubr.msk.f32.mxu1 %vm125_vm0, %v114_v5  ;;  %3029 = vmatprep.mubr.msk.f32.mxu0 %vm125_vm0, %v114_v5  ;;  %v291_v7 = vld [vmem:[#allocation6] sm:$0xff]  ;;  %v292_v8 = vld [vmem:[#allocation6 + $0x8] sm:$0xff]  ;;  %v379_v14 = vld [vmem:[#allocation7] sm:$0xff]  ;;  %vm394_vm3 = vcmask 261120   ;;  %vm2644_vm4 = vcmask 1040384   ;;  %vm2646_vm5 = vcmask 1041408  }
  0x5b   :  { %v375_v9 = vld [vmem:[%s4364_s4] sm:$0xff]  ;;  %3322 = vmatprep.subr.bf16.mxu0 %v3321_v3  ;;  %v3329_v10 = vpack.c.bf16 %v292_v8, %v291_v7  ;;  %v376_v11 = vld [vmem:[%s4364_s4 + $0x8] sm:$0xff]  ;;  %v380_v15 = vld [vmem:[#allocation7 + $0x8] sm:$0xff]  ;;  %vm2648_vm6 = vcmask 1042432   ;;  %vm2650_vm7 = vcmask 1043456   ;;  %vm2652_vm8 = vcmask 1044480  }
  0x5c   :  { %3326 = vmatprep.subr.bf16.mxu1 %v3325_v6  ;;  %3324 = vmatpush3.bf16.msra.mxu0 %v3321_v3  ;;  %v115_v12 = vld [vmem:[%s4360_s0 + $0x8] sm:$0xff]  ;;  %v3970_v13 = vpack.c.bf16 %v376_v11, %v375_v9  ;;  %v377_v17 = vld [vmem:[%s4364_s4 + $0x10] sm:$0xff]  ;;  %v378_v18 = vld [vmem:[%s4364_s4 + $0x18] sm:$0xff]  ;;  %v3981_v19 = vpack.c.bf16 %v380_v15, %v379_v14  ;;  %vm2654_vm9 = vcmask 1045504   ;;  %vm2656_vm10 = vcmask 1046528  }
  0x5d   :  { %3328 = vmatpush3.bf16.msra.mxu1 %v3325_v6  ;;  %3330 = vmatprep.subr.bf16.mxu0 %v3329_v10  ;;  %v3985_v20 = vpack.c.bf16 %v378_v18, %v377_v17  ;;  %v381_v21 = vld [vmem:[#allocation7 + $0x10] sm:$0xff]  ;;  %v382_v22 = vld [vmem:[#allocation7 + $0x18] sm:$0xff]  ;;  %v383_v23 = vld [vmem:[#allocation9] sm:$0xff]  ;;  %vm2757_vm11 = vcmask 31744  }
  0x5e   :  { %3333 = vmatprep.subr.bf16.mxu1 %v3788_v16  ;;  %v384_v24 = vld [vmem:[#allocation9 + $0x8] sm:$0xff]  ;;  %v3993_v26 = vpack.c.bf16 %v382_v22, %v381_v21  ;;  %v385_v28 = vld [vmem:[#allocation9 + $0x10] sm:$0xff]  ;;  %v386_v29 = vld [vmem:[#allocation9 + $0x18] sm:$0xff] }
  0x5f   :  { %3030 = vmatmul.mubr.msk.f32.vlgmr.msra.gmra.mrb[0].mxu0 %vm125_vm0, %v115_v12  ;;  %v3999_v27 = vpack.c.bf16 %v384_v24, %v383_v23  ;;  %v4005_v30 = vpack.c.bf16 %v386_v29, %v385_v28  ;;  %v2821_v35 = vld [vmem:[%s4367_s7] ss:$0 sm:$0xff] }
  0x60   :  { %3037 = vmatmul.mubr.msk.f32.vlgmr.msra.gmra.mrb[0].mxu1 %vm125_vm0, %v115_v12  ;;  %3332 = vmatpush3.bf16.msra.mxu0 %v3329_v10  ;;  %v2824_v47 = vld [vmem:[%s4368_s8] ss:$0 sm:$0xff] }
  0x61   :  { %3335 = vmatpush3.bf16.msra.mxu1 %v3970_v13  ;;  %3043 = vmatprep.mubr.msk.f32.mxu0 %vm125_vm0, %v114_v5  ;;  %v4048_v63 = vld [vmem:[%s4370_s10] ss:$0 sm:$0xff] }
  0x62   :  { %3336 = vmatprep.subr.bf16.mxu1 %v3788_v16  ;;  %3339 = vmatprep.subr.bf16.mxu0 %v3788_v16  ;;  %v2827_v1 = vld [vmem:[%s4369_s9] ss:$0 sm:$0xff] }
  0x63   :  { %3044 = vmatmul.mubr.msk.f32.vlgmr.msra.gmra.mrb[2].mxu0 %vm125_vm0, %v115_v12  ;;  %3054 = vmatprep.mubr.msk.f32.mxu1 %vm3789_vm1, %v3790_v25 }
  0x64   :  { %3341 = vmatpush3.bf16.msra.mxu0 %v3981_v19  ;;  %3065 = vmatprep.mubr.msk.f32.mxu0 %vm3789_vm1, %v3790_v25 }
  0x65   :  { %3338 = vmatpush3.bf16.msra.mxu1 %v3985_v20  ;;  %3342 = vmatprep.subr.bf16.mxu0 %v3788_v16 }
  0x66   :  { %3345 = vmatprep.subr.bf16.mxu1 %v3788_v16 }
  0x68   :  { %3055 = vmatmul.mubr.f32.vlgmr.msra.gmra.mrb[2].mxu1 %v3790_v25  ;;  %3344 = vmatpush3.bf16.msra.mxu0 %v3993_v26 }
  0x69   :  { %3347 = vmatpush3.bf16.msra.mxu1 %v3999_v27  ;;  %3076 = vmatprep.mubr.msk.f32.mxu1 %vm3789_vm1, %v3790_v25 }
  0x6a   :  { %3348 = vmatprep.subr.bf16.mxu1 %v3788_v16  ;;  %3351 = vmatprep.subr.bf16.mxu0 %v3788_v16 }
  0x6b   :  { %3066 = vmatmul.mubr.f32.vlgmr.msra.gmra.mrb[4].mxu0 %v3790_v25 }
  0x6c   :  { %3353 = vmatpush3.bf16.msra.mxu0 %v3970_v13  ;;  %3087 = vmatprep.mubr.msk.f32.mxu0 %vm3789_vm1, %v3790_v25 }
  0x6d   :  { %3350 = vmatpush3.bf16.msra.mxu1 %v4005_v30  ;;  %3354 = vmatprep.subr.bf16.mxu0 %v3788_v16 }
  0x6e   :  { %3357 = vmatprep.subr.bf16.mxu1 %v3788_v16 }
  0x70   :  { %3077 = vmatmul.mubr.f32.vlgmr.msra.gmra.mrb[4].mxu1 %v3790_v25  ;;  %3356 = vmatpush3.bf16.msra.mxu0 %v3985_v20 }
  0x71   :  { %3359 = vmatpush3.bf16.msra.mxu1 %v3981_v19  ;;  %3098 = vmatprep.mubr.msk.f32.mxu1 %vm3789_vm1, %v3790_v25 }
  0x72   :  { %3360 = vmatprep.subr.bf16.mxu1 %v3788_v16  ;;  %3363 = vmatprep.subr.bf16.mxu0 %v3788_v16 }
  0x75   :  { %3362 = vmatpush3.bf16.msra.mxu1 %v3993_v26 }
  0x76   :  { %3369 = vmatprep.subr.bf16.mxu1 %v3788_v16 }
 0x132   :  { %v3031_v31 = vpop.f32.mrb[0].mxu0 }
 0x133   :  { %v3038_v32 = vpop.f32.mrb[0].mxu1  ;;  %v198_v33 = vpop.f32.mrb[1].mxu0  ;;  %v4032_v39 = vadd.f32 %v3031_v31, %v2821_v35 }
 0x134   :  { %v282_v34 = vpop.f32.mrb[1].mxu1  ;;  %v4030_v38 = vadd.f32 %v2821_v35, %v198_v33  ;;  %v4041_v53 = vadd.f32 %v3038_v32, %v2824_v47 }
 0x135   :  { %v4039_v50 = vadd.f32 %v2824_v47, %v282_v34 }
 0x136   :  { %v3045_v36 = vpop.f32.mrb[2].mxu0 }
 0x137   :  { %v366_v37 = vpop.f32.mrb[3].mxu0  ;;  %v4056_v10 = vadd.f32 %v3045_v36, %v2827_v1 }
 0x138   :  { %v4054_v6 = vadd.f32 %v2827_v1, %v366_v37 }
 0x13b   :  { %v464_v40 = vpop.f32.mrb[2].mxu1 }
 0x13c   :  { %v539_v41 = vrot.slane %v464_v40, 1  ;;  %v542_v42 = vadd.f32 %v464_v40, %v4030_v38  ;;  %v3056_v43 = vpop.f32.mrb[3].mxu1 }
 0x13e   :  { %v543_v44 = vadd.f32 %v539_v41, %v4032_v39  ;;  %v2831_v45 = vmul.f32 -1.442695, %v542_v42  ;;  %v534_v46 = vpop.f32.mrb[4].mxu0 }
 0x13f   :  { %v3067_v48 = vpop.f32.mrb[5].mxu0  ;;  %v557_v51 = vrot.slane %v534_v46, 1  ;;  %v560_v54 = vadd.f32 %v534_v46, %v4039_v50 }
 0x140   :  { %3496 = vpow2.f32 %v2831_v45  ;;  %v2832_v49 = vmul.f32 -1.442695, %v543_v44 }
 0x141   :  { %v561_v56 = vadd.f32 %v557_v51, %v4041_v53  ;;  %v2833_v57 = vmul.f32 -1.442695, %v560_v54 }
 0x142   :  { %3498 = vpow2.f32 %v2832_v49 }
 0x143   :  { %v640_v52 = vpop.f32.mrb[4].mxu1  ;;  %v2834_v59 = vmul.f32 -1.442695, %v561_v56  ;;  %3500 = vpow2.f32 %v2833_v57 }
 0x144   :  { %v3078_v55 = vpop.f32.mrb[5].mxu1  ;;  %v641_v0 = vadd.f32 %v4048_v63, %v640_v52 }
 0x146   :  { %v645_v3 = vrot.slane %v641_v0, 1 }
 0x14a   :  { %v3497_v58 = vpop.eup %3496 }
 0x14b   :  { %v550_v60 = vadd.f32 1.0, %v3497_v58 }
 0x14c   :  { %v3499_v61 = vpop.eup %3498 }
 0x14d   :  { %v551_v62 = vadd.f32 1.0, %v3499_v61  ;;  %3502 = vrcp.f32 %v550_v60  ;;  %v3501_v2 = vpop.eup %3500 }
 0x14e   :  { %3504 = vpow2.f32 %v2834_v59  ;;  %v568_v9 = vadd.f32 1.0, %v3501_v2 }
 0x14f   :  { %3506 = vrcp.f32 %v551_v62 }
 0x157   :  { %v3503_v4 = vpop.eup %3502 }
 0x158   :  { %v3505_v5 = vpop.eup %3504  ;;  %v648_v7 = vmul.f32 %v3503_v4, %v641_v0 }
 0x159   :  { %v3507_v8 = vpop.eup %3506  ;;  %v569_v14 = vadd.f32 1.0, %v3505_v5 }
 0x15a   :  { %v649_v11 = vmul.f32 %v3507_v8, %v645_v3  ;;  %v650_v12 = vadd.f32 %v648_v7, %v4054_v6 }
 0x15c   :  { %v651_v15 = vadd.f32 %v649_v11, %v4056_v10  ;;  %3508 = vtanh.f32 %v650_v12 }
 0x15d   :  { %3510 = vrcp.f32 %v568_v9 }
 0x15e   :  { %3512 = vtanh.f32 %v651_v15 }
 0x15f   :  { %3514 = vrcp.f32 %v569_v14 }
 0x166   :  { %v3509_v17 = vpop.eup %3508 }
 0x167   :  { %v3511_v18 = vpop.eup %3510  ;;  %v654_v21 = vsub.f32 0.0, %v3509_v17 }
 0x168   :  { %v3513_v22 = vpop.eup %3512 }
 0x169   :  { %v655_v23 = vsub.f32 0.0, %v3513_v22  ;;  %v656_v24 = vmul.f32 %v3511_v18, %v654_v21  ;;  %v3515_v28 = vpop.eup %3514 }
 0x16b   :  { %v657_v29 = vmul.f32 %v3515_v28, %v655_v23  ;;  %v4060_v31 = vadd.f32 %v3509_v17, %v656_v24 }
 0x16d   :  { %v4062_v32 = vadd.f32 %v3513_v22, %v657_v29 }
 0x16f   :  { %v662_v33 = vrot.slane %v4062_v32, 7 }
 0x171   :  { %v664_v34 = vsel %vm663_vm2, %v662_v33, %v4060_v31 }
 0x172   :  { %3088 = vmatmul.mubr.msk.f32.vlgmr.msra.gmra.mrb[6].mxu0 %vm394_vm3, %v664_v34  ;;  %3099 = vmatmul.mubr.msk.f32.vlgmr.msra.gmra.mrb[6].mxu1 %vm394_vm3, %v664_v34 }
 0x173   :  { %3365 = vmatpush3.bf16.msra.mxu0 %v3999_v27  ;;  %3109 = vmatprep.mubr.msk.f32.mxu0 %vm3789_vm1, %v3790_v25 }
 0x174   :  { %3366 = vmatprep.subr.bf16.mxu0 %v3788_v16  ;;  %3371 = vmatpush3.bf16.msra.mxu1 %v3970_v13 }
 0x175   :  { %3372 = vmatprep.subr.bf16.mxu1 %v3788_v16  ;;  %3120 = vmatprep.mubr.msk.f32.mxu1 %vm3789_vm1, %v3790_v25 }
 0x177   :  { %3368 = vmatpush3.bf16.msra.mxu0 %v4005_v30 }
 0x178   :  { %3375 = vmatprep.subr.bf16.mxu0 %v3788_v16  ;;  %3374 = vmatpush3.bf16.msra.mxu1 %v3985_v20 }
 0x179   :  { %3381 = vmatprep.subr.bf16.mxu1 %v3788_v16 }
 0x17a   :  { %3110 = vmatmul.mubr.msk.f32.vlgmr.msra.gmra.mrb[8].mxu0 %vm394_vm3, %v664_v34 }
 0x17b   :  { %3377 = vmatpush3.bf16.msra.mxu0 %v3981_v19  ;;  %3131 = vmatprep.mubr.msk.f32.mxu0 %vm3789_vm1, %v3790_v25 }
 0x17c   :  { %3378 = vmatprep.subr.bf16.mxu0 %v3788_v16 }
 0x17f   :  { %3380 = vmatpush3.bf16.msra.mxu0 %v3993_v26 }
 0x180   :  { %3387 = vmatprep.subr.bf16.mxu0 %v3788_v16 }
 0x245   :  { %v733_v35 = vpop.f32.mrb[6].mxu0  ;;  %v803_v36 = vpop.f32.mrb[6].mxu1 }
 0x246   :  { %v808_v37 = vrot.slane %v733_v35, 7  ;;  %v812_v40 = vadd.f32 %v733_v35, %v4032_v39  ;;  %v3089_v41 = vpop.f32.mrb[7].mxu0  ;;  %v3100_v42 = vpop.f32.mrb[7].mxu1  ;;  %v826_v48 = vrot.slane %v803_v36, 7  ;;  %v830_v49 = vadd.f32 %v803_v36, %v4041_v53 }
 0x248   :  { %v811_v43 = vadd.f32 %v808_v37, %v4030_v38  ;;  %v2838_v44 = vmul.f32 -1.442695, %v812_v40  ;;  %v829_v54 = vadd.f32 %v826_v48, %v4039_v50  ;;  %v2840_v57 = vmul.f32 -1.442695, %v830_v49 }
 0x24a   :  { %v2837_v45 = vmul.f32 -1.442695, %v811_v43  ;;  %3516 = vpow2.f32 %v2838_v44  ;;  %v2839_v58 = vmul.f32 -1.442695, %v829_v54 }
 0x24c   :  { %3518 = vpow2.f32 %v2837_v45 }
 0x24d   :  { %v909_v46 = vpop.f32.mrb[8].mxu0 }
 0x24e   :  { %v3111_v47 = vpop.f32.mrb[9].mxu0  ;;  %v910_v59 = vadd.f32 %v4048_v63, %v909_v46 }
 0x250   :  { %v914_v61 = vrot.slane %v910_v59, 7 }
 0x254   :  { %v3517_v51 = vpop.eup %3516 }
 0x255   :  { %v820_v52 = vadd.f32 1.0, %v3517_v51 }
 0x256   :  { %v3519_v55 = vpop.eup %3518 }
 0x257   :  { %v819_v56 = vadd.f32 1.0, %v3519_v55  ;;  %3520 = vrcp.f32 %v820_v52 }
 0x259   :  { %3522 = vrcp.f32 %v819_v56 }
 0x25a   :  { %3524 = vpow2.f32 %v2840_v57 }
 0x25b   :  { %3526 = vpow2.f32 %v2839_v58 }
 0x261   :  { %v3521_v60 = vpop.eup %3520 }
 0x262   :  { %v918_v62 = vmul.f32 %v3521_v60, %v910_v59 }
 0x263   :  { %v3523_v0 = vpop.eup %3522 }
 0x264   :  { %v917_v1 = vmul.f32 %v3523_v0, %v914_v61  ;;  %v920_v2 = vadd.f32 %v918_v62, %v4056_v10  ;;  %v3525_v3 = vpop.eup %3524 }
 0x265   :  { %v3527_v5 = vpop.eup %3526  ;;  %v838_v7 = vadd.f32 1.0, %v3525_v3 }
 0x266   :  { %v919_v4 = vadd.f32 %v917_v1, %v4054_v6  ;;  %3528 = vtanh.f32 %v920_v2  ;;  %v837_v8 = vadd.f32 1.0, %v3527_v5 }
 0x268   :  { %3530 = vtanh.f32 %v919_v4 }
 0x269   :  { %3532 = vrcp.f32 %v838_v7 }
 0x26a   :  { %3534 = vrcp.f32 %v837_v8 }
 0x270   :  { %v3529_v9 = vpop.eup %3528 }
 0x271   :  { %v926_v11 = vrot.slane %v3529_v9, 1 }
 0x272   :  { %v3531_v12 = vpop.eup %3530 }
 0x273   :  { %v925_v14 = vrot.slane %v3531_v12, 1  ;;  %v930_v15 = vsub.f32 %v4062_v32, %v926_v11  ;;  %v3533_v21 = vpop.eup %3532 }
 0x274   :  { %v3535_v24 = vpop.eup %3534 }
 0x275   :  { %v929_v17 = vsub.f32 %v4060_v31, %v925_v14  ;;  %v934_v18 = vrot.slane %v930_v15, 7 }
 0x277   :  { %v933_v22 = vrot.slane %v929_v17, 7  ;;  %v938_v23 = vmul.f32 %v3533_v21, %v934_v18 }
 0x279   :  { %v937_v28 = vmul.f32 %v3535_v24, %v933_v22  ;;  %v4097_v29 = vadd.f32 %v3529_v9, %v938_v23 }
 0x27b   :  { %v4099_v33 = vadd.f32 %v3531_v12, %v937_v28 }
 0x27d   :  { %v943_v34 = vrot.slane %v4099_v33, 1 }
 0x27f   :  { %v944_v35 = vsel %vm663_vm2, %v4097_v29, %v943_v34 }
 0x280   :  { %3121 = vmatmul.mubr.msk.f32.vlgmr.msra.gmra.mrb[8].mxu1 %vm394_vm3, %v944_v35  ;;  %3132 = vmatmul.mubr.msk.f32.vlgmr.msra.gmra.mrb[10].mxu0 %vm394_vm3, %v944_v35 }
 0x281   :  { %3383 = vmatpush3.bf16.msra.mxu1 %v3999_v27  ;;  %3142 = vmatprep.mubr.msk.f32.mxu1 %vm3789_vm1, %v3790_v25 }
 0x282   :  { %3384 = vmatprep.subr.bf16.mxu1 %v3788_v16  ;;  %3389 = vmatpush3.bf16.msra.mxu0 %v3970_v13 }
 0x283   :  { %3390 = vmatprep.subr.bf16.mxu0 %v3788_v16  ;;  %3153 = vmatprep.mubr.msk.f32.mxu0 %vm3789_vm1, %v3790_v25 }
 0x285   :  { %3386 = vmatpush3.bf16.msra.mxu1 %v4005_v30 }
 0x286   :  { %3393 = vmatprep.subr.bf16.mxu1 %v3788_v16  ;;  %3392 = vmatpush3.bf16.msra.mxu0 %v3985_v20 }
 0x287   :  { %3399 = vmatprep.subr.bf16.mxu0 %v3788_v16 }
 0x288   :  { %3143 = vmatmul.mubr.msk.f32.vlgmr.msra.gmra.mrb[10].mxu1 %vm394_vm3, %v944_v35 }
 0x289   :  { %3395 = vmatpush3.bf16.msra.mxu1 %v3981_v19  ;;  %3164 = vmatprep.mubr.msk.f32.mxu1 %vm3789_vm1, %v3790_v25 }
 0x28a   :  { %3396 = vmatprep.subr.bf16.mxu1 %v3788_v16 }
 0x28d   :  { %3398 = vmatpush3.bf16.msra.mxu1 %v3993_v26 }
 0x28e   :  { %3405 = vmatprep.subr.bf16.mxu1 %v3788_v16 }
 0x353   :  { %v1013_v36 = vpop.f32.mrb[8].mxu1  ;;  %v1083_v37 = vpop.f32.mrb[10].mxu0 }
 0x354   :  { %v1088_v40 = vrot.slane %v1013_v36, 6  ;;  %v1089_v41 = vrot.slane %v1013_v36, 7  ;;  %v3122_v42 = vpop.f32.mrb[9].mxu1  ;;  %v3133_v43 = vpop.f32.mrb[11].mxu0  ;;  %v1107_v51 = vrot.slane %v1083_v37, 6  ;;  %v1108_v52 = vrot.slane %v1083_v37, 7 }
 0x356   :  { %v1092_v44 = vadd.f32 %v1088_v40, %v4030_v38  ;;  %v1093_v45 = vadd.f32 %v1089_v41, %v4032_v39  ;;  %v1111_v54 = vadd.f32 %v1107_v51, %v4039_v50  ;;  %v1112_v56 = vadd.f32 %v1108_v52, %v4041_v53 }
 0x358   :  { %v2844_v46 = vmul.f32 -1.442695, %v1092_v44  ;;  %v2845_v47 = vmul.f32 -1.442695, %v1093_v45  ;;  %v2846_v60 = vmul.f32 -1.442695, %v1111_v54 }
 0x359   :  { %v2847_v61 = vmul.f32 -1.442695, %v1112_v56 }
 0x35a   :  { %3536 = vpow2.f32 %v2844_v46 }
 0x35b   :  { %3538 = vpow2.f32 %v2845_v47  ;;  %v1191_v48 = vpop.f32.mrb[10].mxu1 }
 0x35c   :  { %v3144_v49 = vpop.f32.mrb[11].mxu1  ;;  %v1192_v62 = vadd.f32 %v4048_v63, %v1191_v48 }
 0x35e   :  { %v1196_v0 = vrot.slane %v1192_v62, 6  ;;  %v1197_v2 = vrot.slane %v1192_v62, 7 }
 0x364   :  { %v3537_v55 = vpop.eup %3536 }
 0x365   :  { %v3539_v57 = vpop.eup %3538  ;;  %v1100_v58 = vadd.f32 1.0, %v3537_v55 }
 0x366   :  { %v1101_v59 = vadd.f32 1.0, %v3539_v57 }
 0x367   :  { %3540 = vrcp.f32 %v1100_v58 }
 0x368   :  { %3542 = vrcp.f32 %v1101_v59 }
 0x369   :  { %3544 = vpow2.f32 %v2846_v60 }
 0x36a   :  { %3546 = vpow2.f32 %v2847_v61 }
 0x371   :  { %v3541_v1 = vpop.eup %3540 }
 0x372   :  { %v3543_v3 = vpop.eup %3542  ;;  %v1200_v4 = vmul.f32 %v3541_v1, %v1196_v0 }
 0x373   :  { %v1201_v5 = vmul.f32 %v3543_v3, %v1197_v2  ;;  %v3545_v8 = vpop.eup %3544 }
 0x374   :  { %v1202_v7 = vadd.f32 %v1200_v4, %v4054_v6  ;;  %v3547_v11 = vpop.eup %3546  ;;  %v1119_v12 = vadd.f32 1.0, %v3545_v8 }
 0x375   :  { %v1203_v9 = vadd.f32 %v1201_v5, %v4056_v10  ;;  %v1120_v14 = vadd.f32 1.0, %v3547_v11 }
 0x376   :  { %3548 = vtanh.f32 %v1202_v7 }
 0x377   :  { %3550 = vtanh.f32 %v1203_v9 }
 0x378   :  { %3552 = vrcp.f32 %v1119_v12 }
 0x379   :  { %3554 = vrcp.f32 %v1120_v14 }
 0x380   :  { %v3549_v15 = vpop.eup %3548 }
 0x381   :  { %v3551_v17 = vpop.eup %3550  ;;  %v1208_v18 = vrot.slane %v3549_v15, 1 }
 0x382   :  { %v1209_v21 = vrot.slane %v3551_v17, 1  ;;  %v3553_v28 = vpop.eup %3552 }
 0x383   :  { %v1212_v22 = vsub.f32 %v4099_v33, %v1208_v18  ;;  %v3555_v35 = vpop.eup %3554 }
 0x384   :  { %v1213_v23 = vsub.f32 %v4097_v29, %v1209_v21 }
 0x385   :  { %v1216_v24 = vrot.slane %v1212_v22, 7 }
 0x386   :  { %v1217_v34 = vrot.slane %v1213_v23, 7 }
 0x387   :  { %v1220_v36 = vmul.f32 %v3553_v28, %v1216_v24 }
 0x388   :  { %v1221_v37 = vmul.f32 %v3555_v35, %v1217_v34 }
 0x389   :  { %v4134_v40 = vadd.f32 %v3549_v15, %v1220_v36 }
 0x38a   :  { %v4136_v41 = vadd.f32 %v3551_v17, %v1221_v37 }
 0x38b   :  { %v1226_v42 = vrot.slane %v4134_v40, 2 }
 0x38c   :  { %v1227_v43 = vrot.slane %v4136_v41, 1 }
 0x38e   :  { %v1228_v44 = vsel %vm663_vm2, %v1227_v43, %v1226_v42 }
 0x38f   :  { %3154 = vmatmul.mubr.msk.f32.vlgmr.msra.gmra.mrb[12].mxu0 %vm394_vm3, %v1228_v44  ;;  %3165 = vmatmul.mubr.msk.f32.vlgmr.msra.gmra.mrb[12].mxu1 %vm394_vm3, %v1228_v44 }
 0x390   :  { %3401 = vmatpush3.bf16.msra.mxu0 %v3999_v27  ;;  %3175 = vmatprep.mubr.msk.f32.mxu0 %vm3789_vm1, %v3790_v25 }
 0x391   :  { %3402 = vmatprep.subr.bf16.mxu0 %v3788_v16  ;;  %3407 = vmatpush3.bf16.msra.mxu1 %v3970_v13 }
 0x392   :  { %3408 = vmatprep.subr.bf16.mxu1 %v3788_v16  ;;  %3186 = vmatprep.mubr.msk.f32.mxu1 %vm3789_vm1, %v3790_v25 }
 0x394   :  { %3404 = vmatpush3.bf16.msra.mxu0 %v4005_v30 }
 0x395   :  { %3411 = vmatprep.subr.bf16.mxu0 %v3788_v16  ;;  %3410 = vmatpush3.bf16.msra.mxu1 %v3985_v20 }
 0x396   :  { %3417 = vmatprep.subr.bf16.mxu1 %v3788_v16 }
 0x397   :  { %3176 = vmatmul.mubr.msk.f32.vlgmr.msra.gmra.mrb[14].mxu0 %vm394_vm3, %v1228_v44 }
 0x398   :  { %3413 = vmatpush3.bf16.msra.mxu0 %v3981_v19  ;;  %3197 = vmatprep.mubr.msk.f32.mxu0 %vm3789_vm1, %v3790_v25 }
 0x399   :  { %3414 = vmatprep.subr.bf16.mxu0 %v3788_v16 }
 0x39c   :  { %3416 = vmatpush3.bf16.msra.mxu0 %v3993_v26 }
 0x39d   :  { %3423 = vmatprep.subr.bf16.mxu0 %v3788_v16 }
 0x462   :  { %v1297_v45 = vpop.f32.mrb[12].mxu0  ;;  %v1367_v46 = vpop.f32.mrb[12].mxu1 }
 0x463   :  { %v1372_v47 = vrot.slane %v1297_v45, 5  ;;  %v1373_v48 = vrot.slane %v1297_v45, 6  ;;  %v3155_v49 = vpop.f32.mrb[13].mxu0  ;;  %v3166_v51 = vpop.f32.mrb[13].mxu1  ;;  %v1391_v59 = vrot.slane %v1367_v46, 5  ;;  %v1392_v60 = vrot.slane %v1367_v46, 6 }
 0x465   :  { %v1376_v52 = vadd.f32 %v1372_v47, %v4030_v38  ;;  %v1377_v54 = vadd.f32 %v1373_v48, %v4032_v39  ;;  %v1395_v61 = vadd.f32 %v1391_v59, %v4039_v50  ;;  %v1396_v0 = vadd.f32 %v1392_v60, %v4041_v53 }
 0x467   :  { %v2851_v55 = vmul.f32 -1.442695, %v1376_v52  ;;  %v2852_v56 = vmul.f32 -1.442695, %v1377_v54  ;;  %v2853_v4 = vmul.f32 -1.442695, %v1395_v61 }
 0x468   :  { %v2854_v5 = vmul.f32 -1.442695, %v1396_v0 }
 0x469   :  { %3556 = vpow2.f32 %v2851_v55 }
 0x46a   :  { %3558 = vpow2.f32 %v2852_v56  ;;  %v1475_v57 = vpop.f32.mrb[14].mxu0 }
 0x46b   :  { %v3177_v58 = vpop.f32.mrb[15].mxu0  ;;  %v1476_v7 = vadd.f32 %v4048_v63, %v1475_v57 }
 0x46d   :  { %v1480_v8 = vrot.slane %v1476_v7, 5  ;;  %v1481_v11 = vrot.slane %v1476_v7, 6 }
 0x473   :  { %v3557_v62 = vpop.eup %3556 }
 0x474   :  { %v3559_v1 = vpop.eup %3558  ;;  %v1384_v2 = vadd.f32 1.0, %v3557_v62 }
 0x475   :  { %v1385_v3 = vadd.f32 1.0, %v3559_v1 }
 0x476   :  { %3560 = vrcp.f32 %v1384_v2 }
 0x477   :  { %3562 = vrcp.f32 %v1385_v3 }
 0x478   :  { %3564 = vpow2.f32 %v2853_v4 }
 0x479   :  { %3566 = vpow2.f32 %v2854_v5 }
 0x480   :  { %v3561_v9 = vpop.eup %3560 }
 0x481   :  { %v3563_v12 = vpop.eup %3562  ;;  %v1484_v14 = vmul.f32 %v3561_v9, %v1480_v8 }
 0x482   :  { %v1485_v15 = vmul.f32 %v3563_v12, %v1481_v11  ;;  %v3565_v18 = vpop.eup %3564 }
 0x483   :  { %v1486_v17 = vadd.f32 %v1484_v14, %v4054_v6  ;;  %v3567_v22 = vpop.eup %3566  ;;  %v1403_v23 = vadd.f32 1.0, %v3565_v18 }
 0x484   :  { %v1487_v21 = vadd.f32 %v1485_v15, %v4056_v10  ;;  %v1404_v24 = vadd.f32 1.0, %v3567_v22 }
 0x485   :  { %3568 = vtanh.f32 %v1486_v17 }
 0x486   :  { %3570 = vtanh.f32 %v1487_v21 }
 0x487   :  { %3572 = vrcp.f32 %v1403_v23 }
 0x488   :  { %3574 = vrcp.f32 %v1404_v24 }
 0x48f   :  { %v3569_v28 = vpop.eup %3568 }
 0x490   :  { %v3571_v34 = vpop.eup %3570  ;;  %v1492_v35 = vrot.slane %v3569_v28, 1 }
 0x491   :  { %v1493_v36 = vrot.slane %v3571_v34, 1  ;;  %v3573_v44 = vpop.eup %3572 }
 0x492   :  { %v1496_v37 = vsub.f32 %v4134_v40, %v1492_v35  ;;  %v3575_v46 = vpop.eup %3574 }
 0x493   :  { %v1497_v42 = vsub.f32 %v4136_v41, %v1493_v36 }
 0x494   :  { %v1500_v43 = vrot.slane %v1496_v37, 7 }
 0x495   :  { %v1501_v45 = vrot.slane %v1497_v42, 7 }
 0x496   :  { %v1504_v47 = vmul.f32 %v3573_v44, %v1500_v43 }
 0x497   :  { %v1505_v48 = vmul.f32 %v3575_v46, %v1501_v45 }
 0x498   :  { %v4171_v49 = vadd.f32 %v3569_v28, %v1504_v47 }
 0x499   :  { %v4173_v51 = vadd.f32 %v3571_v34, %v1505_v48 }
 0x49a   :  { %v1510_v52 = vrot.slane %v4171_v49, 3 }
 0x49b   :  { %v1511_v54 = vrot.slane %v4173_v51, 2 }
 0x49d   :  { %v1512_v55 = vsel %vm663_vm2, %v1511_v54, %v1510_v52 }
 0x49e   :  { %3187 = vmatmul.mubr.msk.f32.vlgmr.msra.gmra.mrb[14].mxu1 %vm394_vm3, %v1512_v55  ;;  %3198 = vmatmul.mubr.msk.f32.vlgmr.msra.gmra.mrb[16].mxu0 %vm394_vm3, %v1512_v55 }
 0x49f   :  { %3419 = vmatpush3.bf16.msra.mxu1 %v3999_v27  ;;  %3208 = vmatprep.mubr.msk.f32.mxu1 %vm3789_vm1, %v3790_v25 }
 0x4a0   :  { %3420 = vmatprep.subr.bf16.mxu1 %v3788_v16  ;;  %3425 = vmatpush3.bf16.msra.mxu0 %v3970_v13 }
 0x4a1   :  { %3426 = vmatprep.subr.bf16.mxu0 %v3788_v16  ;;  %3219 = vmatprep.mubr.msk.f32.mxu0 %vm3789_vm1, %v3790_v25 }
 0x4a3   :  { %3422 = vmatpush3.bf16.msra.mxu1 %v4005_v30 }
 0x4a4   :  { %3429 = vmatprep.subr.bf16.mxu1 %v3788_v16  ;;  %3428 = vmatpush3.bf16.msra.mxu0 %v3985_v20 }
 0x4a5   :  { %3435 = vmatprep.subr.bf16.mxu0 %v3788_v16 }
 0x4a6   :  { %3209 = vmatmul.mubr.msk.f32.vlgmr.msra.gmra.mrb[16].mxu1 %vm394_vm3, %v1512_v55 }
 0x4a7   :  { %3431 = vmatpush3.bf16.msra.mxu1 %v3981_v19  ;;  %3230 = vmatprep.mubr.msk.f32.mxu1 %vm3789_vm1, %v3790_v25 }
 0x4a8   :  { %3432 = vmatprep.subr.bf16.mxu1 %v3788_v16 }
 0x4ab   :  { %3434 = vmatpush3.bf16.msra.mxu1 %v3993_v26 }
 0x4ac   :  { %3441 = vmatprep.subr.bf16.mxu1 %v3788_v16 }
 0x571   :  { %v1581_v56 = vpop.f32.mrb[14].mxu1  ;;  %v1651_v57 = vpop.f32.mrb[16].mxu0 }
 0x572   :  { %v1656_v58 = vrot.slane %v1581_v56, 4  ;;  %v1657_v59 = vrot.slane %v1581_v56, 5  ;;  %v3188_v60 = vpop.f32.mrb[15].mxu1  ;;  %v3199_v61 = vpop.f32.mrb[17].mxu0  ;;  %v1675_v5 = vrot.slane %v1651_v57, 4  ;;  %v1676_v7 = vrot.slane %v1651_v57, 5 }
 0x574   :  { %v1660_v62 = vadd.f32 %v1656_v58, %v4030_v38  ;;  %v1661_v0 = vadd.f32 %v1657_v59, %v4032_v39  ;;  %v1679_v8 = vadd.f32 %v1675_v5, %v4039_v50  ;;  %v1680_v11 = vadd.f32 %v1676_v7, %v4041_v53 }
 0x576   :  { %v2858_v1 = vmul.f32 -1.442695, %v1660_v62  ;;  %v2859_v2 = vmul.f32 -1.442695, %v1661_v0  ;;  %v2860_v17 = vmul.f32 -1.442695, %v1679_v8 }
 0x577   :  { %v2861_v18 = vmul.f32 -1.442695, %v1680_v11 }
 0x578   :  { %3576 = vpow2.f32 %v2858_v1 }
 0x579   :  { %3578 = vpow2.f32 %v2859_v2  ;;  %v1759_v3 = vpop.f32.mrb[16].mxu1 }
 0x57a   :  { %v3210_v4 = vpop.f32.mrb[17].mxu1  ;;  %v1760_v21 = vadd.f32 %v4048_v63, %v1759_v3 }
 0x57c   :  { %v1764_v22 = vrot.slane %v1760_v21, 4  ;;  %v1765_v24 = vrot.slane %v1760_v21, 5 }
 0x582   :  { %v3577_v9 = vpop.eup %3576 }
 0x583   :  { %v3579_v12 = vpop.eup %3578  ;;  %v1668_v14 = vadd.f32 1.0, %v3577_v9 }
 0x584   :  { %v1669_v15 = vadd.f32 1.0, %v3579_v12 }
 0x585   :  { %3580 = vrcp.f32 %v1668_v14 }
 0x586   :  { %3582 = vrcp.f32 %v1669_v15 }
 0x587   :  { %3584 = vpow2.f32 %v2860_v17 }
 0x588   :  { %3586 = vpow2.f32 %v2861_v18 }
 0x58f   :  { %v3581_v23 = vpop.eup %3580 }
 0x590   :  { %v3583_v28 = vpop.eup %3582  ;;  %v1768_v34 = vmul.f32 %v3581_v23, %v1764_v22 }
 0x591   :  { %v1769_v35 = vmul.f32 %v3583_v28, %v1765_v24  ;;  %v3585_v37 = vpop.eup %3584 }
 0x592   :  { %v1770_v36 = vadd.f32 %v1768_v34, %v4054_v6  ;;  %v3587_v43 = vpop.eup %3586  ;;  %v1687_v44 = vadd.f32 1.0, %v3585_v37 }
 0x593   :  { %v1771_v42 = vadd.f32 %v1769_v35, %v4056_v10  ;;  %v1688_v45 = vadd.f32 1.0, %v3587_v43 }
 0x594   :  { %3588 = vtanh.f32 %v1770_v36 }
 0x595   :  { %3590 = vtanh.f32 %v1771_v42 }
 0x596   :  { %3592 = vrcp.f32 %v1687_v44 }
 0x597   :  { %3594 = vrcp.f32 %v1688_v45 }
 0x59e   :  { %v3589_v46 = vpop.eup %3588 }
 0x59f   :  { %v3591_v47 = vpop.eup %3590  ;;  %v1776_v48 = vrot.slane %v3589_v46, 1 }
 0x5a0   :  { %v1777_v52 = vrot.slane %v3591_v47, 1  ;;  %v3593_v57 = vpop.eup %3592 }
 0x5a1   :  { %v1780_v54 = vsub.f32 %v4171_v49, %v1776_v48  ;;  %v3595_v59 = vpop.eup %3594 }
 0x5a2   :  { %v1781_v55 = vsub.f32 %v4173_v51, %v1777_v52 }
 0x5a3   :  { %v1784_v56 = vrot.slane %v1780_v54, 7 }
 0x5a4   :  { %v1785_v58 = vrot.slane %v1781_v55, 7 }
 0x5a5   :  { %v1788_v60 = vmul.f32 %v3593_v57, %v1784_v56 }
 0x5a6   :  { %v1789_v61 = vmul.f32 %v3595_v59, %v1785_v58 }
 0x5a7   :  { %v4208_v62 = vadd.f32 %v3589_v46, %v1788_v60 }
 0x5a8   :  { %v4210_v0 = vadd.f32 %v3591_v47, %v1789_v61 }
 0x5a9   :  { %v1794_v1 = vrot.slane %v4208_v62, 4 }
 0x5aa   :  { %v1795_v2 = vrot.slane %v4210_v0, 3 }
 0x5ac   :  { %v1796_v3 = vsel %vm663_vm2, %v1795_v2, %v1794_v1 }
 0x5ad   :  { %3220 = vmatmul.mubr.msk.f32.vlgmr.msra.gmra.mrb[18].mxu0 %vm394_vm3, %v1796_v3  ;;  %3231 = vmatmul.mubr.msk.f32.vlgmr.msra.gmra.mrb[18].mxu1 %vm394_vm3, %v1796_v3 }
 0x5ae   :  { %3437 = vmatpush3.bf16.msra.mxu0 %v3999_v27  ;;  %3241 = vmatprep.mubr.msk.f32.mxu0 %vm3789_vm1, %v3790_v25 }
 0x5af   :  { %3438 = vmatprep.subr.bf16.mxu0 %v3788_v16  ;;  %3443 = vmatpush3.bf16.msra.mxu1 %v3970_v13 }
 0x5b0   :  { %3444 = vmatprep.subr.bf16.mxu1 %v3788_v16  ;;  %3252 = vmatprep.mubr.msk.f32.mxu1 %vm3789_vm1, %v3790_v25 }
 0x5b2   :  { %3440 = vmatpush3.bf16.msra.mxu0 %v4005_v30 }
 0x5b3   :  { %3447 = vmatprep.subr.bf16.mxu0 %v3788_v16  ;;  %3446 = vmatpush3.bf16.msra.mxu1 %v3985_v20 }
 0x5b4   :  { %3453 = vmatprep.subr.bf16.mxu1 %v3788_v16 }
 0x5b5   :  { %3242 = vmatmul.mubr.msk.f32.vlgmr.msra.gmra.mrb[20].mxu0 %vm394_vm3, %v1796_v3 }
 0x5b6   :  { %3449 = vmatpush3.bf16.msra.mxu0 %v3981_v19  ;;  %3263 = vmatprep.mubr.msk.f32.mxu0 %vm3789_vm1, %v3790_v25 }
 0x5b7   :  { %3450 = vmatprep.subr.bf16.mxu0 %v3788_v16 }
 0x5ba   :  { %3452 = vmatpush3.bf16.msra.mxu0 %v3993_v26 }
 0x5bb   :  { %3459 = vmatprep.subr.bf16.mxu0 %v3788_v16 }
 0x680   :  { %v1865_v4 = vpop.f32.mrb[18].mxu0  ;;  %v1935_v5 = vpop.f32.mrb[18].mxu1 }
 0x681   :  { %v1940_v7 = vrot.slane %v1865_v4, 3  ;;  %v1941_v8 = vrot.slane %v1865_v4, 4  ;;  %v3221_v9 = vpop.f32.mrb[19].mxu0  ;;  %v3232_v11 = vpop.f32.mrb[19].mxu1  ;;  %v1959_v22 = vrot.slane %v1935_v5, 3  ;;  %v1960_v23 = vrot.slane %v1935_v5, 4 }
 0x683   :  { %v1944_v12 = vadd.f32 %v1940_v7, %v4030_v38  ;;  %v1945_v14 = vadd.f32 %v1941_v8, %v4032_v39  ;;  %v1963_v24 = vadd.f32 %v1959_v22, %v4039_v50  ;;  %v1964_v34 = vadd.f32 %v1960_v23, %v4041_v53 }
 0x685   :  { %v2865_v15 = vmul.f32 -1.442695, %v1944_v12  ;;  %v2866_v17 = vmul.f32 -1.442695, %v1945_v14  ;;  %v2867_v42 = vmul.f32 -1.442695, %v1963_v24 }
 0x686   :  { %v2868_v43 = vmul.f32 -1.442695, %v1964_v34 }
 0x687   :  { %3596 = vpow2.f32 %v2865_v15 }
 0x688   :  { %3598 = vpow2.f32 %v2866_v17  ;;  %v2043_v18 = vpop.f32.mrb[20].mxu0 }
 0x689   :  { %v3243_v21 = vpop.f32.mrb[21].mxu0  ;;  %v2044_v44 = vadd.f32 %v4048_v63, %v2043_v18 }
 0x68b   :  { %v2048_v45 = vrot.slane %v2044_v44, 3  ;;  %v2049_v47 = vrot.slane %v2044_v44, 4 }
 0x691   :  { %v3597_v28 = vpop.eup %3596 }
 0x692   :  { %v3599_v35 = vpop.eup %3598  ;;  %v1952_v36 = vadd.f32 1.0, %v3597_v28 }
 0x693   :  { %v1953_v37 = vadd.f32 1.0, %v3599_v35 }
 0x694   :  { %3600 = vrcp.f32 %v1952_v36 }
 0x695   :  { %3602 = vrcp.f32 %v1953_v37 }
 0x696   :  { %3604 = vpow2.f32 %v2867_v42 }
 0x697   :  { %3606 = vpow2.f32 %v2868_v43 }
 0x69e   :  { %v3601_v46 = vpop.eup %3600 }
 0x69f   :  { %v3603_v48 = vpop.eup %3602  ;;  %v2052_v52 = vmul.f32 %v3601_v46, %v2048_v45 }
 0x6a0   :  { %v2053_v54 = vmul.f32 %v3603_v48, %v2049_v47  ;;  %v3605_v56 = vpop.eup %3604 }
 0x6a1   :  { %v2054_v55 = vadd.f32 %v2052_v52, %v4054_v6  ;;  %v3607_v58 = vpop.eup %3606  ;;  %v1971_v59 = vadd.f32 1.0, %v3605_v56 }
 0x6a2   :  { %v2055_v57 = vadd.f32 %v2053_v54, %v4056_v10  ;;  %v1972_v60 = vadd.f32 1.0, %v3607_v58 }
 0x6a3   :  { %3608 = vtanh.f32 %v2054_v55 }
 0x6a4   :  { %3610 = vtanh.f32 %v2055_v57 }
 0x6a5   :  { %3612 = vrcp.f32 %v1971_v59 }
 0x6a6   :  { %3614 = vrcp.f32 %v1972_v60 }
 0x6ad   :  { %v3609_v61 = vpop.eup %3608 }
 0x6ae   :  { %v3611_v1 = vpop.eup %3610  ;;  %v2060_v2 = vrot.slane %v3609_v61, 1 }
 0x6af   :  { %v2061_v3 = vrot.slane %v3611_v1, 1  ;;  %v3613_v8 = vpop.eup %3612 }
 0x6b0   :  { %v2064_v4 = vsub.f32 %v4208_v62, %v2060_v2  ;;  %v3615_v11 = vpop.eup %3614 }
 0x6b1   :  { %v2065_v5 = vsub.f32 %v4210_v0, %v2061_v3 }
 0x6b2   :  { %v2068_v7 = vrot.slane %v2064_v4, 7 }
 0x6b3   :  { %v2069_v9 = vrot.slane %v2065_v5, 7 }
 0x6b4   :  { %v2072_v12 = vmul.f32 %v3613_v8, %v2068_v7 }
 0x6b5   :  { %v2073_v14 = vmul.f32 %v3615_v11, %v2069_v9 }
 0x6b6   :  { %v4245_v15 = vadd.f32 %v3609_v61, %v2072_v12 }
 0x6b7   :  { %v4247_v17 = vadd.f32 %v3611_v1, %v2073_v14 }
 0x6b8   :  { %v2078_v18 = vrot.slane %v4245_v15, 5 }
 0x6b9   :  { %v2079_v21 = vrot.slane %v4247_v17, 4 }
 0x6bb   :  { %v2080_v22 = vsel %vm663_vm2, %v2079_v21, %v2078_v18 }
 0x6bc   :  { %3253 = vmatmul.mubr.msk.f32.vlgmr.msra.gmra.mrb[20].mxu1 %vm394_vm3, %v2080_v22  ;;  %3264 = vmatmul.mubr.msk.f32.vlgmr.msra.gmra.mrb[22].mxu0 %vm394_vm3, %v2080_v22 }
 0x6bd   :  { %3455 = vmatpush3.bf16.msra.mxu1 %v3999_v27  ;;  %3274 = vmatprep.mubr.msk.f32.mxu1 %vm3789_vm1, %v3790_v25 }
 0x6be   :  { %3456 = vmatprep.subr.bf16.mxu1 %v3788_v16  ;;  %3461 = vmatpush3.bf16.msra.mxu0 %v3970_v13 }
 0x6bf   :  { %3462 = vmatprep.subr.bf16.mxu0 %v3788_v16  ;;  %3285 = vmatprep.mubr.msk.f32.mxu0 %vm3789_vm1, %v3790_v25 }
 0x6c1   :  { %3458 = vmatpush3.bf16.msra.mxu1 %v4005_v30 }
 0x6c2   :  { %3465 = vmatprep.subr.bf16.mxu1 %v3788_v16  ;;  %3464 = vmatpush3.bf16.msra.mxu0 %v3985_v20 }
 0x6c3   :  { %3471 = vmatprep.subr.bf16.mxu0 %v3788_v16 }
 0x6c4   :  { %3275 = vmatmul.mubr.msk.f32.vlgmr.msra.gmra.mrb[22].mxu1 %vm394_vm3, %v2080_v22 }
 0x6c5   :  { %3467 = vmatpush3.bf16.msra.mxu1 %v3981_v19  ;;  %3296 = vmatprep.mubr.msk.f32.mxu1 %vm3789_vm1, %v3790_v25 }
 0x6c6   :  { %3468 = vmatprep.subr.bf16.mxu1 %v3788_v16 }
 0x6c9   :  { %3470 = vmatpush3.bf16.msra.mxu1 %v3993_v26 }
 0x78f   :  { %v2149_v13 = vpop.f32.mrb[20].mxu1  ;;  %v2219_v23 = vpop.f32.mrb[22].mxu0 }
 0x790   :  { %v2224_v24 = vrot.slane %v2149_v13, 2  ;;  %v2225_v28 = vrot.slane %v2149_v13, 3  ;;  %v3254_v34 = vpop.f32.mrb[21].mxu1  ;;  %v3265_v35 = vpop.f32.mrb[23].mxu0  ;;  %v2243_v44 = vrot.slane %v2219_v23, 2  ;;  %v2244_v45 = vrot.slane %v2219_v23, 3 }
 0x792   :  { %v2228_v20 = vadd.f32 %v2224_v24, %v4030_v38  ;;  %v2229_v36 = vadd.f32 %v2225_v28, %v4032_v39  ;;  %v2247_v26 = vadd.f32 %v2243_v44, %v4039_v50  ;;  %v2248_v47 = vadd.f32 %v2244_v45, %v4041_v53 }
 0x794   :  { %v2872_v37 = vmul.f32 -1.442695, %v2228_v20  ;;  %v2873_v42 = vmul.f32 -1.442695, %v2229_v36  ;;  %v2874_v55 = vmul.f32 -1.442695, %v2247_v26 }
 0x795   :  { %v2875_v56 = vmul.f32 -1.442695, %v2248_v47 }
 0x796   :  { %3616 = vpow2.f32 %v2872_v37 }
 0x797   :  { %3618 = vpow2.f32 %v2873_v42  ;;  %v2327_v19 = vpop.f32.mrb[22].mxu1 }
 0x798   :  { %v3276_v43 = vpop.f32.mrb[23].mxu1  ;;  %v2328_v57 = vadd.f32 %v4048_v63, %v2327_v19  ;;  %v2665_v19 = vld [vmem:[%s4371_s11] sm:$0xff] }
 0x799   :  { %v2666_v43 = vld [vmem:[%s4371_s11 + $0x8] sm:$0xff] }
 0x79a   :  { %v2332_v58 = vrot.slane %v2328_v57, 2  ;;  %v2333_v60 = vrot.slane %v2328_v57, 3  ;;  %v3477_v44 = vpack.c.bf16 %v2666_v43, %v2665_v19  ;;  %v2658_v43 = vsel %vm2644_vm4, %v4062_v32, %v4097_v29 }
 0x79c   :  { %3478 = vmatprep.subr.bf16.mxu1 %v3477_v44 }
 0x7a0   :  { %v3617_v46 = vpop.eup %3616 }
 0x7a1   :  { %v3619_v48 = vpop.eup %3618  ;;  %v2236_v52 = vadd.f32 1.0, %v3617_v46 }
 0x7a2   :  { %v2237_v54 = vadd.f32 1.0, %v3619_v48 }
 0x7a3   :  { %3620 = vrcp.f32 %v2236_v52 }
 0x7a4   :  { %3622 = vrcp.f32 %v2237_v54 }
 0x7a5   :  { %3624 = vpow2.f32 %v2874_v55 }
 0x7a6   :  { %3626 = vpow2.f32 %v2875_v56 }
 0x7ad   :  { %v3621_v59 = vpop.eup %3620 }
 0x7ae   :  { %v3623_v61 = vpop.eup %3622  ;;  %v2336_v1 = vmul.f32 %v3621_v59, %v2332_v58 }
 0x7af   :  { %v2337_v2 = vmul.f32 %v3623_v61, %v2333_v60  ;;  %v3625_v4 = vpop.eup %3624 }
 0x7b0   :  { %v2338_v3 = vadd.f32 %v2336_v1, %v4054_v6  ;;  %v3627_v7 = vpop.eup %3626  ;;  %v2255_v8 = vadd.f32 1.0, %v3625_v4 }
 0x7b1   :  { %v2339_v5 = vadd.f32 %v2337_v2, %v4056_v10  ;;  %v2256_v9 = vadd.f32 1.0, %v3627_v7  ;;  %v3664_v7 = vld [vmem:[%s4370_s10] ss:$0 sm:$0xff] }
 0x7b2   :  { %3628 = vtanh.f32 %v2338_v3 }
 0x7b3   :  { %3630 = vtanh.f32 %v2339_v5 }
 0x7b4   :  { %3632 = vrcp.f32 %v2255_v8 }
 0x7b5   :  { %3634 = vrcp.f32 %v2256_v9 }
 0x7bc   :  { %v3629_v11 = vpop.eup %3628 }
 0x7bd   :  { %v3631_v63 = vpop.eup %3630  ;;  %v2344_v12 = vrot.slane %v3629_v11, 1 }
 0x7be   :  { %v2345_v14 = vrot.slane %v3631_v63, 1  ;;  %v3633_v13 = vpop.eup %3632 }
 0x7bf   :  { %v2348_v18 = vsub.f32 %v4245_v15, %v2344_v12  ;;  %v3635_v24 = vpop.eup %3634 }
 0x7c0   :  { %v2349_v21 = vsub.f32 %v4247_v17, %v2345_v14 }
 0x7c1   :  { %v2352_v22 = vrot.slane %v2348_v18, 7 }
 0x7c2   :  { %v2353_v23 = vrot.slane %v2349_v21, 7 }
 0x7c3   :  { %v2356_v28 = vmul.f32 %v3633_v13, %v2352_v22 }
 0x7c4   :  { %v2357_v34 = vmul.f32 %v3635_v24, %v2353_v23 }
 0x7c5   :  { %v4281_v35 = vadd.f32 %v3629_v11, %v2356_v28 }
 0x7c6   :  { %v4283_v20 = vadd.f32 %v3631_v63, %v2357_v34 }
 0x7c7   :  { %v2362_v36 = vrot.slane %v4281_v35, 6 }
 0x7c8   :  { %v2363_v37 = vrot.slane %v4283_v20, 5 }
 0x7ca   :  { %v2364_v42 = vsel %vm663_vm2, %v2363_v37, %v2362_v36 }
 0x7cb   :  { %3286 = vmatmul.mubr.msk.f32.vlgmr.msra.gmra.mrb[24].mxu0 %vm394_vm3, %v2364_v42  ;;  %3297 = vmatmul.mubr.msk.f32.vlgmr.msra.gmra.mrb[24].mxu1 %vm394_vm3, %v2364_v42 }
 0x7cc   :  { %3473 = vmatpush3.bf16.msra.mxu0 %v3999_v27  ;;  %3307 = vmatprep.mubr.msk.f32.mxu0 %vm3789_vm1, %v3790_v25  ;;  %v2667_v27 = vld [vmem:[%s4371_s11 + $0x10] sm:$0xff] }
 0x7cd   :  { %3474 = vmatprep.subr.bf16.mxu0 %v3788_v16  ;;  %v2668_v16 = vld [vmem:[%s4371_s11 + $0x18] sm:$0xff]  ;;  %3480 = vmatpush3.bf16.msra.mxu1 %v3477_v44 }
 0x7ce   :  { %v3481_v25 = vpack.c.bf16 %v2668_v16, %v2667_v27 }
 0x7d0   :  { %3476 = vmatpush3.bf16.msra.mxu0 %v4005_v30  ;;  %3482 = vmatprep.subr.bf16.mxu1 %v3481_v25 }
 0x7d1   :  { %3484 = vmatpush3.bf16.msra.mxu1 %v3481_v25 }
 0x7d3   :  { %3308 = vmatmul.mubr.msk.f32.vlgmr.msra.gmra.mrb[26].mxu0 %vm394_vm3, %v2364_v42 }
 0x89e   :  { %v2433_v30 = vpop.f32.mrb[24].mxu0  ;;  %v2503_v45 = vpop.f32.mrb[24].mxu1 }
 0x89f   :  { %v2508_v26 = vrot.slane %v2433_v30, 1  ;;  %v2509_v46 = vrot.slane %v2433_v30, 2  ;;  %v3287_v47 = vpop.f32.mrb[25].mxu0  ;;  %v3298_v48 = vpop.f32.mrb[25].mxu1  ;;  %v2527_v59 = vrot.slane %v2503_v45, 1  ;;  %v2528_v60 = vrot.slane %v2503_v45, 2 }
 0x8a0   :  { %v2659_v45 = vsel %vm2646_vm5, %v2658_v43, %v4136_v41 }
 0x8a1   :  { %v2512_v52 = vadd.f32 %v2508_v26, %v4030_v38  ;;  %v2513_v54 = vadd.f32 %v2509_v46, %v4032_v39  ;;  %v2531_v61 = vadd.f32 %v2527_v59, %v4039_v50  ;;  %v2532_v2 = vadd.f32 %v2528_v60, %v4041_v53 }
 0x8a2   :  { %v2660_v32 = vsel %vm2648_vm6, %v2659_v45, %v4173_v51  ;;  %v2884_v51 = vld [vmem:[%s4372_s12] ss:$0 sm:$0xff]  ;;  %s3791_s12 = smov 124  }
 0x8a3   :  { %v2879_v55 = vmul.f32 -1.442695, %v2512_v52  ;;  %v2880_v56 = vmul.f32 -1.442695, %v2513_v54  ;;  %v2881_v38 = vmul.f32 -1.442695, %v2531_v61  ;;  %v2661_v26 = vsel %vm2650_vm7, %v2660_v32, %v4210_v0 }
 0x8a4   :  { %v2882_v39 = vmul.f32 -1.442695, %v2532_v2  ;;  %v2662_v41 = vsel %vm2652_vm8, %v2661_v26, %v4247_v17 }
 0x8a5   :  { %3636 = vpow2.f32 %v2879_v55 }
 0x8a6   :  { %3638 = vpow2.f32 %v2880_v56  ;;  %v2611_v57 = vpop.f32.mrb[26].mxu0 }
 0x8a7   :  { %v3309_v58 = vpop.f32.mrb[27].mxu0  ;;  %v2612_v8 = vadd.f32 %v3664_v7, %v2611_v57 }
 0x8a9   :  { %v2616_v9 = vrot.slane %v2612_v8, 1  ;;  %v2617_v50 = vrot.slane %v2612_v8, 2 }
 0x8af   :  { %v3637_v1 = vpop.eup %3636 }
 0x8b0   :  { %v3639_v3 = vpop.eup %3638  ;;  %v2520_v4 = vadd.f32 1.0, %v3637_v1 }
 0x8b1   :  { %v2521_v5 = vadd.f32 1.0, %v3639_v3 }
 0x8b2   :  { %3640 = vrcp.f32 %v2520_v4 }
 0x8b3   :  { %3642 = vrcp.f32 %v2521_v5 }
 0x8b4   :  { %3644 = vpow2.f32 %v2881_v38 }
 0x8b5   :  { %3646 = vpow2.f32 %v2882_v39 }
 0x8bc   :  { %v3641_v11 = vpop.eup %3640 }
 0x8bd   :  { %v3643_v63 = vpop.eup %3642  ;;  %v2620_v12 = vmul.f32 %v3641_v11, %v2616_v9 }
 0x8be   :  { %v2621_v53 = vmul.f32 %v3643_v63, %v2617_v50  ;;  %v3645_v18 = vpop.eup %3644 }
 0x8bf   :  { %v2622_v14 = vadd.f32 %v2620_v12, %v4054_v6  ;;  %v3647_v22 = vpop.eup %3646  ;;  %v2539_v13 = vadd.f32 1.0, %v3645_v18 }
 0x8c0   :  { %v2623_v21 = vadd.f32 %v2621_v53, %v4056_v10  ;;  %v2540_v23 = vadd.f32 1.0, %v3647_v22  ;;  %v2645_v10 = vsel %vm2644_vm4, %v4060_v31, %v4099_v33 }
 0x8c1   :  { %3648 = vtanh.f32 %v2622_v14  ;;  %v2647_v27 = vsel %vm2646_vm5, %v2645_v10, %v4134_v40 }
 0x8c2   :  { %3650 = vtanh.f32 %v2623_v21  ;;  %v2649_v30 = vsel %vm2648_vm6, %v2647_v27, %v4171_v49 }
 0x8c3   :  { %3652 = vrcp.f32 %v2539_v13  ;;  %v2651_v31 = vsel %vm2650_vm7, %v2649_v30, %v4208_v62  ;;  %v2663_v62 = vsel %vm2654_vm9, %v2662_v41, %v4283_v20 }
 0x8c4   :  { %3654 = vrcp.f32 %v2540_v23  ;;  %v2653_v40 = vsel %vm2652_vm8, %v2651_v31, %v4245_v15 }
 0x8c5   :  { %v2655_v49 = vsel %vm2654_vm9, %v2653_v40, %v4281_v35 }
 0x8cb   :  { %v3649_v24 = vpop.eup %3648 }
 0x8cc   :  { %v3651_v28 = vpop.eup %3650  ;;  %v2628_v34 = vrot.slane %v3649_v24, 1 }
 0x8cd   :  { %v2629_v36 = vrot.slane %v3651_v28, 1  ;;  %v3653_v19 = vpop.eup %3652 }
 0x8ce   :  { %v2632_v37 = vsub.f32 %v4281_v35, %v2628_v34  ;;  %v3655_v16 = vpop.eup %3654 }
 0x8cf   :  { %v2633_v6 = vsub.f32 %v4283_v20, %v2629_v36 }
 0x8d0   :  { %v2636_v42 = vrot.slane %v2632_v37, 7 }
 0x8d1   :  { %v2637_v44 = vrot.slane %v2633_v6, 7 }
 0x8d2   :  { %v2640_v25 = vmul.f32 %v3653_v19, %v2636_v42 }
 0x8d3   :  { %v2641_v33 = vmul.f32 %v3655_v16, %v2637_v44 }
 0x8d4   :  { %v2642_v29 = vadd.f32 %v3649_v24, %v2640_v25 }
 0x8d5   :  { %v2643_v46 = vadd.f32 %v3651_v28, %v2641_v33 }
 0x8d6   :  { %v2657_v47 = vsel %vm2656_vm10, %v2655_v49, %v2642_v29 }
 0x8d7   :  { %3318 = vmatprep.mubr.msk.f32.mxu1 %vm394_vm3, %v2657_v47  ;;  %v2664_v48 = vsel %vm2656_vm10, %v2663_v62, %v2643_v46 }
 0x8d8   :  { %3319 = vmatmul.mubr.msk.f32.vlgmr.msra.gmra.mrb[26].mxu1 %vm394_vm3, %v2664_v48 }
 0x9ab   :  { %v3320_v15 = vpop.f32.mrb[26].mxu1 }
 0x9ac   :  { %v2754_v0 = vadd.f32 %v3320_v15, %v2884_v51  ;;  %v2748_v35 = vpop.f32.mrb[27].mxu1 }
 0x9ad   :  { %v2749_v52 = vadd.f32 %v2884_v51, %v2748_v35 }
 0x9ae   :  { %v2767_v54 = vand.u32 2147483647, %v2754_v0  ;;  %2759 = vst.msk [vmem:[%s4373_s13 + $0x8] sm:$0xff] %vm2757_vm11, %v2754_v0  ;;  %v2761_v63 = vmax.f32 %v2754_v0, 0.0  ;;  %vm2763_vm15 = vcmp.ne.f32.partialorder %v2754_v0, %v2754_v0 }
 0x9af   :  { %v2766_v17 = vand.u32 2147483647, %v2749_v52  ;;  %2758 = vst.msk [vmem:[%s4373_s13] sm:$0xff] %vm2757_vm11, %v2749_v52  ;;  %v2760_v12 = vmax.f32 %v2749_v52, 0.0  ;;  %vm2762_vm14 = vcmp.ne.f32.partialorder %v2749_v52, %v2749_v52 }
 0x9b0   :  { %v2769_v20 = vsub.f32 0.0, %v2767_v54 }
 0x9b1   :  { %v2768_v55 = vsub.f32 0.0, %v2766_v17 }
 0x9b2   :  { %v2772_v56 = vmul.f32 1.442695, %v2769_v20 }
 0x9b3   :  { %v2770_v57 = vmul.f32 1.442695, %v2768_v55 }
 0x9b4   :  { %3656 = vpow2.f32 %v2772_v56 }
 0x9b5   :  { %3658 = vpow2.f32 %v2770_v57 }
 0x9be   :  { %v3657_v58 = vpop.eup %3656 }
 0x9bf   :  { %v3659_v59 = vpop.eup %3658  ;;  %v2783_v60 = vadd.f32 1.0, %v3657_v58  ;;  %v2786_v1 = vmul.f32 -0.5, %v3657_v58  ;;  %v2789_v5 = vand.u32 2147483647, %v3657_v58 }
 0x9c0   :  { %v2774_v61 = vadd.f32 1.0, %v3659_v59  ;;  %v2777_v2 = vmul.f32 -0.5, %v3659_v59  ;;  %v2780_v38 = vand.u32 2147483647, %v3659_v59 }
 0x9c1   :  { %3660 = vlog2.f32 %v2783_v60  ;;  %v2787_v3 = vadd.f32 1.0, %v2786_v1  ;;  %vm2790_vm12 = vcmp.lt.f32.partialorder %v2789_v5, 0.0004427343 }
 0x9c2   :  { %3662 = vlog2.f32 %v2774_v61  ;;  %v2778_v4 = vadd.f32 1.0, %v2777_v2  ;;  %vm2781_vm13 = vcmp.lt.f32.partialorder %v2780_v38, 0.0004427343 }
 0x9c3   :  { %v2788_v9 = vmul.f32 %v3657_v58, %v2787_v3 }
 0x9c4   :  { %v2779_v50 = vmul.f32 %v3659_v59, %v2778_v4 }
 0x9cb   :  { %v3661_v39 = vpop.eup %3660 }
 0x9cc   :  { %v3663_v7 = vpop.eup %3662  ;;  %v2785_v8 = vmul.f32 0.6931472, %v3661_v39 }
 0x9cd   :  { %v2776_v11 = vmul.f32 0.6931472, %v3663_v7 }
 0x9ce   :  { %v2791_v53 = vsel %vm2790_vm12, %v2788_v9, %v2785_v8 }
 0x9cf   :  { %v2782_v14 = vsel %vm2781_vm13, %v2779_v50, %v2776_v11  ;;  %v2793_v18 = vadd.f32 %v2791_v53, %v2761_v63 }
 0x9d0   :  { %v2792_v21 = vadd.f32 %v2782_v14, %v2760_v12 }
 0x9d1   :  { %v2795_v13 = vsel %vm2763_vm15, %v2754_v0, %v2793_v18 }
 0x9d2   :  { %v2794_v22 = vsel %vm2762_vm14, %v2749_v52, %v2792_v21  ;;  %v2797_v28 = vmax.f32 %v2795_v13, 1e-06 }
 0x9d3   :  { %v2796_v23 = vmax.f32 %v2794_v22, 1e-06 }
 0x9d4   :  { %v2799_v34 = vmin.f32 %v2797_v28, 1.0 }
 0x9d5   :  { %v2798_v24 = vmin.f32 %v2796_v23, 1.0 }
 0x9d7   :  { %2802 = vrot.lane.b32.xlu0 %v2798_v24, %s3791_s12 }
 0x9db   :  { %2804 = vrot.lane.b32.xlu0 %v2799_v34, %s3791_s12 }
 0xa49   :  { %v2803_v36 = vpop.permute.xlu0 %2802 }
 0xa4a   :  { %2808 = vst.msk [vmem:[%s4374_s14] sm:$0xff] %vm2757_vm11, %v2803_v36 }
 0xa4d   :  { %v2805_v37 = vpop.permute.xlu0 %2804 }
 0xa4e   :  { %2809 = vst.msk [vmem:[%s4374_s14 + $0x8] sm:$0xff] %vm2757_vm11, %v2805_v37 }
 0xa4f   :  { %2818 = vsyncpa [#allocation3], 1 }
 0xa50   :  { %2819 = vsyncpa [#allocation5], 1 }
 0xa51   :  { %2820 = vsyncpa [#allocation8], 1 }

</bundles_post_ra>
